<compile_context>
chip_gen: v6e
topology: v6e:2x2x1
jax: 0.10.0
libtpu: 0.0.40
codegen_flags: <defaults>
</compile_context>

<pallas_src>
import jax
import jax.numpy as jnp
import numpy as np
from jax.experimental import pallas as pl
from jax.experimental.pallas import tpu as pltpu


# ---------------------------------------------------------------------------
# Pallas kernel: whole recurrent loop (fused LSTM step + folded memory read +
# fused mem_out linear) runs in one program; state is register-carried.
# ---------------------------------------------------------------------------
def _make_kernel(T, W, R, N):
    H = (R + 1) * W                      # width of core = [rv_0..rv_{R-1} | h]

    def kernel(enc_ref, wg_ref, w2_ref, bias_ref, out_ref, hf_ref, cf_ref):
        f32, bf16 = jnp.float32, jnp.bfloat16
        Bp = enc_ref.shape[0]

        # Loop-invariant operands, loaded once (time loop is fully unrolled).
        # w2 slab row offsets are multiples of the bf16 sublane tile (16).
        wg   = wg_ref[...]                                  # ((R+2)W, 4W) bf16
        wm2  = w2_ref[0:H, 0:W]                             # ((R+1)W, W)  bf16
        ws   = w2_ref[H:H + W, 0:R * N]                     # (W, R*N)     bf16
        mblk = w2_ref[H + W:H + W + R * N, 0:R * W]         # (R*N, R*W)   bf16
        bias = bias_ref[:, :4 * W]                          # (Bp, 4W) f32
        bm   = bias_ref[:, 4 * W:]                          # (Bp, W)  f32

        # h0 = c0 = 0 (PyTorch LSTM default); read vectors start at zero.
        # (Padded batch rows run on zeros: softmax over zero scores is uniform,
        #  no NaN risk; the wrapper slices those rows off.)
        h32  = jnp.zeros((Bp, W), f32)
        c    = jnp.zeros((Bp, W), f32)
        core = jnp.zeros((Bp, H), bf16)       # [rv_0 .. rv_{R-1} | h], bf16

        # T is small & static → full unroll with register-carried state.
        # TODO(synk): for large T, chunk T via an "arbitrary" grid axis with
        # h/c/rv carried in VMEM scratch instead of full unroll.
        for t in range(T):
            # ---- fused LSTM gates: one (Bp,(R+2)W) x ((R+2)W,4W) MXU op ----
            b = enc_ref[:, t * W:(t + 1) * W]               # (Bp, W) bf16
            x = jnp.concatenate([b, core], axis=-1)         # (Bp, (R+2)W) bf16
            gates = jnp.dot(x, wg, preferred_element_type=f32) + bias
            # gate columns were reordered to [i, f, o, g] in the wrapper
            sg = jax.nn.sigmoid(gates[:, :3 * W])
            gg = jnp.tanh(gates[:, 3 * W:])
            c = sg[:, W:2 * W] * c + sg[:, :W] * gg
            h32 = sg[:, 2 * W:3 * W] * jnp.tanh(c)
            xi = h32.astype(bf16)

            # ---- memory read, all R heads batched, key·M fold in wrapper ---
            # TODO(synk): external DNC `memory` module (write/allocation/
            # linkage dynamics) is approximated by a content-based read.
            scores = jnp.dot(xi, ws, preferred_element_type=f32)   # (Bp, R*N)
            # shared per-row max is a valid stabilizer for every head
            e = jnp.exp(scores - jnp.max(scores, axis=-1, keepdims=True))
            urv = jnp.dot(e.astype(bf16), mblk,
                          preferred_element_type=f32)               # (Bp, R*W)
            rv = []
            for j in range(R):                                      # R static
                inv = pl.reciprocal(
                    jnp.sum(e[:, j * N:(j + 1) * N], axis=-1, keepdims=True),
                    approx=True)
                rv.append(urv[:, j * W:(j + 1) * W] * inv)
            core = jnp.concatenate(rv + [h32], axis=-1).astype(bf16)

            # ---- fused mem_out over [rv_0..rv_{R-1} | ξ] -------------------
            y = jnp.dot(core, wm2, preferred_element_type=f32) + bm
            out_ref[:, t * W:(t + 1) * W] = y

        hf_ref[...] = h32
        cf_ref[...] = c

    return kernel


# ---------------------------------------------------------------------------
# Wrapper (plain-JAX glue: weight folding / stacking, layout, padding)
# ---------------------------------------------------------------------------
def _block_diag(blocks):
    r, c = blocks[0].shape
    out = jnp.zeros((len(blocks) * r, len(blocks) * c), blocks[0].dtype)
    for j, b in enumerate(blocks):
        out = out.at[j * r:(j + 1) * r, j * c:(j + 1) * c].set(b)
    return out


def memory_controller_forward(encoded, params):
    """encoded: (B, T, W) batch-first features from the (external) encoder."""
    B, T, W = encoded.shape
    R = params["W_if"].shape[0]
    N = params["M"].shape[0]
    Bp = max(8, -(-B // 8) * 8)           # pad batch to a multiple of 8
    f32, bf16 = jnp.float32, jnp.bfloat16

    # ---- fused LSTM input weight over x = [b_t | rv_0..rv_{R-1} | h] -------
    # The interleaved cat((b, rv), 2).view(...) is folded into a row
    # permutation of W_ih.T; gate columns are reordered to [i, f, o, g].
    W_ihT = params["W_ih"].T.astype(f32)                        # ((R+1)W, 4W)
    idx_b = np.arange(W) * (R + 1)
    rows = [W_ihT[idx_b]]                                       # b_t block
    rows += [W_ihT[idx_b + 1 + j] for j in range(R)]            # rv_j blocks
    rows += [params["W_hh"].T.astype(f32)]                      # h block
    wg = jnp.concatenate(rows, axis=0)                          # ((R+2)W, 4W)
    gate_perm = np.concatenate([np.arange(0, 2 * W),            # i, f
                                np.arange(3 * W, 4 * W),        # o
                                np.arange(2 * W, 3 * W)])       # g (tanh) last
    wg = wg[:, gate_perm].astype(bf16)
    bias = (params["b_ih"] + params["b_hh"]).astype(f32)[gate_perm]

    # ---- fused mem_out weight over [rv_0..rv_{R-1} | ξ] --------------------
    W_memT = params["W_mem"].T.astype(f32)                      # ((R+1)W, W)
    idx_rv = W + np.arange(W) * R
    wm2 = jnp.concatenate([W_memT[idx_rv + j] for j in range(R)]
                          + [W_memT[:W]], axis=0)               # ((R+1)W, W)

    # ---- folded read path: ws = concat_j(W_if[j] @ M.T) (one matmul/step) --
    M = params["M"].astype(f32)
    ws = jnp.concatenate([params["W_if"][j].astype(f32) @ M.T
                          for j in range(R)], axis=1)           # (W, R*N)
    m_blk = _block_diag([M] * R)                                # (R*N, R*W)

    # ---- pack small constant operands → fewer entry DMAs -------------------
    w2 = jnp.zeros(((R + 2) * W + R * N, max(W, R * N, R * W)), f32)
    w2 = w2.at[0:(R + 1) * W, 0:W].set(wm2)
    w2 = w2.at[(R + 1) * W:(R + 2) * W, 0:R * N].set(ws)
    w2 = w2.at[(R + 2) * W:, 0:R * W].set(m_blk)
    w2 = w2.astype(bf16)

    bias_slab = jnp.concatenate(
        [jnp.broadcast_to(bias[None, :], (Bp, 4 * W)),
         jnp.broadcast_to(params["b_mem"].astype(f32)[None, :], (Bp, W))],
        axis=1)                                                 # (Bp, 5W) f32

    # ---- lane-dense, transpose-free input: (Bp, T*W) bf16 ------------------
    enc = jnp.pad(encoded.astype(f32), ((0, Bp - B), (0, 0), (0, 0)))
    enc = enc.reshape(Bp, T * W).astype(bf16)

    vmem = lambda: pl.BlockSpec(memory_space=pltpu.MemorySpace.VMEM)
    out_shapes = (jax.ShapeDtypeStruct((Bp, T * W), f32),       # dnc (flat)
                  jax.ShapeDtypeStruct((Bp, W), f32),           # final h
                  jax.ShapeDtypeStruct((Bp, W), f32))           # final c

    dnc_flat, h_f, c_f = pl.pallas_call(
        _make_kernel(T, W, R, N),
        out_shape=out_shapes,
        in_specs=[vmem() for _ in range(4)],
        out_specs=(vmem(), vmem(), vmem()),
    )(enc, wg, w2, bias_slab)

    dnc = dnc_flat.reshape(Bp, T, W)[:B]                        # reshape only
    return dnc, (h_f[:B], c_f[:B])


# ---------------------------------------------------------------------------
# Deterministic parameter init (shapes follow MemoryController.__init__:
# hidden_size == cell_size == W, read_heads == R, input_size == (R+1)*W,
# LSTM(input_size -> W), Linear(input_size -> W)).
# ---------------------------------------------------------------------------
def init_params(key, w, r, n_slots):
    in_size = (r + 1) * w
    ks = jax.random.split(key, 8)
    s = 0.1
    return {
        "W_ih": s * jax.random.normal(ks[0], (4 * w, in_size), jnp.float32),
        "W_hh": s * jax.random.normal(ks[1], (4 * w, w), jnp.float32),
        "b_ih": s * jax.random.normal(ks[2], (4 * w,), jnp.float32),
        "b_hh": s * jax.random.normal(ks[3], (4 * w,), jnp.float32),
        "W_mem": s * jax.random.normal(ks[4], (w, in_size), jnp.float32),
        "b_mem": s * jax.random.normal(ks[5], (w,), jnp.float32),
        # memory stand-in: per-head read-key projections + fixed memory matrix
        "W_if": s * jax.random.normal(ks[6], (r, w, w), jnp.float32),
        "M": s * jax.random.normal(ks[7], (n_slots, w), jnp.float32),
    }


# ---------------------------------------------------------------------------
# Pure-JAX f32 reference written the "PyTorch way" (explicit interleaved
# concat), used to validate the folded/fused-weight kernel.
# ---------------------------------------------------------------------------
def reference_forward(encoded, p):
    B, T, W = encoded.shape
    R = p["W_if"].shape[0]
    M = p["M"]
    h = jnp.zeros((B, W)); c = jnp.zeros((B, W))
    rv = jnp.zeros((B, W, R))
    outs = []
    for t in range(T):
        b = encoded[:, t, :][:, :, None]                           # (B, W, 1)
        x = jnp.concatenate([b, rv], axis=2).reshape(B, (R + 1) * W)
        gates = x @ p["W_ih"].T + h @ p["W_hh"].T + p["b_ih"] + p["b_hh"]
        i = jax.nn.sigmoid(gates[:, :W]); f = jax.nn.sigmoid(gates[:, W:2 * W])
        g = jnp.tanh(gates[:, 2 * W:3 * W]); o = jax.nn.sigmoid(gates[:, 3 * W:])
        c = f * c + i * g
        h = o * jnp.tanh(c)
        xi = h
        heads = []
        for j in range(R):
            key = xi @ p["W_if"][j]
            wts = jax.nn.softmax(key @ M.T, axis=-1)
            heads.append(wts @ M)
        rv = jnp.stack(heads, axis=2)                              # (B, W, R)
        mem_enc = jnp.concatenate([xi, rv.reshape(B, W * R)], axis=1)
        outs.append(mem_enc @ p["W_mem"].T + p["b_mem"])
    return jnp.stack(outs, axis=1), h, c


if __name__ == "__main__":
    B, T, W, R, NSLOTS = 4, 8, 32, 2, 16   # batch, seq, cell_size, heads, slots
    key = jax.random.PRNGKey(0)
    kp, kx = jax.random.split(key)
    params = init_params(kp, W, R, NSLOTS)

    # source_lengths only sets the unrolled horizon (loop runs
    # max(source_lengths) steps with no per-element masking in the original).
    source_lengths = [T] * B
    # TODO(synk): external `encoder` module is undefined in the source file;
    # `encoded` stands in for its (B, T, W) output.
    encoded = jax.random.normal(kx, (B, max(source_lengths), W), jnp.float32)

    dnc_encoded, (h_f, c_f) = memory_controller_forward(encoded, params)
    jax.block_until_ready(dnc_encoded)

    ref, rh, rc = reference_forward(encoded, params)
    # bf16 MXU operands (f32 accumulation) + approx reciprocal vs pure-f32 ref.
    assert jnp.allclose(dnc_encoded, ref, atol=5e-2, rtol=5e-2), \
        float(jnp.max(jnp.abs(dnc_encoded - ref)))
    assert jnp.allclose(h_f, rh, atol=5e-2, rtol=5e-2)
    assert jnp.allclose(c_f, rc, atol=5e-2, rtol=5e-2)
    print("KERNEL_OK")
</pallas_src>

<mosaic_0001>
module attributes {stable_mosaic.version = 11 : i64} {
  func.func @kernel(%arg0: memref<8x256xbf16, #tpu.memory_space<vmem>>, %arg1: memref<128x128xbf16, #tpu.memory_space<vmem>>, %arg2: memref<160x64xbf16, #tpu.memory_space<vmem>>, %arg3: memref<8x160xf32, #tpu.memory_space<vmem>>, %arg4: memref<8x256xf32, #tpu.memory_space<vmem>>, %arg5: memref<8x32xf32, #tpu.memory_space<vmem>>, %arg6: memref<8x32xf32, #tpu.memory_space<vmem>>) attributes {dimension_semantics = [], scalar_prefetch = 0 : i64, scratch_operands = 0 : i64, tpu.core_type = #tpu.core_type<tc>} {
    %c0 = arith.constant 0 : index
    %c0_0 = arith.constant 0 : index
    %0 = vector.load %arg1[%c0, %c0_0] : memref<128x128xbf16, #tpu.memory_space<vmem>>, vector<128x128xbf16>
    %c0_1 = arith.constant 0 : index
    %c0_2 = arith.constant 0 : index
    %1 = vector.load %arg2[%c0_1, %c0_2] : memref<160x64xbf16, #tpu.memory_space<vmem>>, vector<96x32xbf16>
    %c96 = arith.constant 96 : index
    %c0_3 = arith.constant 0 : index
    %2 = vector.load %arg2[%c96, %c0_3] : memref<160x64xbf16, #tpu.memory_space<vmem>>, vector<32x32xbf16>
    %c128 = arith.constant 128 : index
    %c0_4 = arith.constant 0 : index
    %3 = vector.load %arg2[%c128, %c0_4] : memref<160x64xbf16, #tpu.memory_space<vmem>>, vector<32x64xbf16>
    %c0_5 = arith.constant 0 : index
    %c0_6 = arith.constant 0 : index
    %4 = vector.load %arg3[%c0_5, %c0_6] : memref<8x160xf32, #tpu.memory_space<vmem>>, vector<8x128xf32>
    %c0_7 = arith.constant 0 : index
    %c128_8 = arith.constant 128 : index
    %5 = vector.load %arg3[%c0_7, %c128_8] : memref<8x160xf32, #tpu.memory_space<vmem>>, vector<8x32xf32>
    %cst = arith.constant 0.000000e+00 : f32
    %6 = vector.broadcast %cst : f32 to vector<8x32xf32>
    %cst_9 = arith.constant 0.000000e+00 : bf16
    %7 = vector.broadcast %cst_9 : bf16 to vector<8x96xbf16>
    %c0_10 = arith.constant 0 : index
    %c0_11 = arith.constant 0 : index
    %8 = vector.load %arg0[%c0_10, %c0_11] : memref<8x256xbf16, #tpu.memory_space<vmem>>, vector<8x32xbf16>
    %9 = tpu.concatenate %8, %7 in 1 : vector<8x32xbf16>, vector<8x96xbf16> -> vector<8x128xbf16>
    %cst_12 = arith.constant dense<0.000000e+00> : vector<8x128xf32>
    %10 = tpu.matmul %9, %0, %cst_12 {dimension_numbers = #tpu.dot_dimension_numbers<[1], [0], [0], [1], [0, 0, 1, 1], [], []>} : vector<8x128xbf16>, vector<128x128xbf16>, vector<8x128xf32> -> vector<8x128xf32>
    %11 = arith.addf %10, %4 : vector<8x128xf32>
    %12 = vector.extract_strided_slice %11 {offsets = [0, 0], sizes = [8, 96], strides = [1, 1]} : vector<8x128xf32> to vector<8x96xf32>
    %13 = arith.negf %12 : vector<8x96xf32>
    %14 = math.exp %13 : vector<8x96xf32>
    %cst_13 = arith.constant 1.000000e+00 : f32
    %15 = vector.broadcast %cst_13 : f32 to vector<8x96xf32>
    %16 = arith.addf %15, %14 : vector<8x96xf32>
    %17 = arith.divf %15, %16 : vector<8x96xf32>
    %18 = vector.extract_strided_slice %11 {offsets = [0, 96], sizes = [8, 32], strides = [1, 1]} : vector<8x128xf32> to vector<8x32xf32>
    %19 = math.tanh %18 : vector<8x32xf32>
    %20 = vector.extract_strided_slice %17 {offsets = [0, 32], sizes = [8, 32], strides = [1, 1]} : vector<8x96xf32> to vector<8x32xf32>
    %21 = arith.mulf %20, %6 : vector<8x32xf32>
    %22 = vector.extract_strided_slice %17 {offsets = [0, 0], sizes = [8, 32], strides = [1, 1]} : vector<8x96xf32> to vector<8x32xf32>
    %23 = arith.mulf %22, %19 : vector<8x32xf32>
    %24 = arith.addf %21, %23 : vector<8x32xf32>
    %25 = vector.extract_strided_slice %17 {offsets = [0, 64], sizes = [8, 32], strides = [1, 1]} : vector<8x96xf32> to vector<8x32xf32>
    %26 = math.tanh %24 : vector<8x32xf32>
    %27 = arith.mulf %25, %26 : vector<8x32xf32>
    %28 = arith.truncf %27 : vector<8x32xf32> to vector<8x32xbf16>
    %cst_14 = arith.constant dense<0.000000e+00> : vector<8x32xf32>
    %29 = tpu.matmul %28, %2, %cst_14 {dimension_numbers = #tpu.dot_dimension_numbers<[1], [0], [0], [1], [0, 0, 1, 1], [], []>} : vector<8x32xbf16>, vector<32x32xbf16>, vector<8x32xf32> -> vector<8x32xf32>
    %cst_15 = arith.constant dense<0xFF800000> : vector<8xf32>
    %30 = vector.multi_reduction <maximumf>, %29, %cst_15 [1] : vector<8x32xf32> to vector<8xf32>
    %31 = vector.shape_cast %30 : vector<8xf32> to vector<8x1xf32>
    %32 = vector.broadcast %31 : vector<8x1xf32> to vector<8x32xf32>
    %33 = arith.subf %29, %32 : vector<8x32xf32>
    %34 = math.exp %33 : vector<8x32xf32>
    %35 = arith.truncf %34 : vector<8x32xf32> to vector<8x32xbf16>
    %cst_16 = arith.constant dense<0.000000e+00> : vector<8x64xf32>
    %36 = tpu.matmul %35, %3, %cst_16 {dimension_numbers = #tpu.dot_dimension_numbers<[1], [0], [0], [1], [0, 0, 1, 1], [], []>} : vector<8x32xbf16>, vector<32x64xbf16>, vector<8x64xf32> -> vector<8x64xf32>
    %37 = vector.extract_strided_slice %34 {offsets = [0, 0], sizes = [8, 16], strides = [1, 1]} : vector<8x32xf32> to vector<8x16xf32>
    %cst_17 = arith.constant dense<0.000000e+00> : vector<8xf32>
    %38 = vector.multi_reduction <add>, %37, %cst_17 [1] : vector<8x16xf32> to vector<8xf32>
    %39 = vector.shape_cast %38 : vector<8xf32> to vector<8x1xf32>
    %40 = tpu.reciprocal %39 {approx = true} : vector<8x1xf32> -> vector<8x1xf32>
    %41 = vector.extract_strided_slice %36 {offsets = [0, 0], sizes = [8, 32], strides = [1, 1]} : vector<8x64xf32> to vector<8x32xf32>
    %42 = vector.broadcast %40 : vector<8x1xf32> to vector<8x32xf32>
    %43 = arith.mulf %41, %42 : vector<8x32xf32>
    %44 = vector.extract_strided_slice %34 {offsets = [0, 16], sizes = [8, 16], strides = [1, 1]} : vector<8x32xf32> to vector<8x16xf32>
    %cst_18 = arith.constant dense<0.000000e+00> : vector<8xf32>
    %45 = vector.multi_reduction <add>, %44, %cst_18 [1] : vector<8x16xf32> to vector<8xf32>
    %46 = vector.shape_cast %45 : vector<8xf32> to vector<8x1xf32>
    %47 = tpu.reciprocal %46 {approx = true} : vector<8x1xf32> -> vector<8x1xf32>
    %48 = vector.extract_strided_slice %36 {offsets = [0, 32], sizes = [8, 32], strides = [1, 1]} : vector<8x64xf32> to vector<8x32xf32>
    %49 = vector.broadcast %47 : vector<8x1xf32> to vector<8x32xf32>
    %50 = arith.mulf %48, %49 : vector<8x32xf32>
    %51 = tpu.concatenate %43, %50, %27 in 1 : vector<8x32xf32>, vector<8x32xf32>, vector<8x32xf32> -> vector<8x96xf32>
    %52 = arith.truncf %51 : vector<8x96xf32> to vector<8x96xbf16>
    %cst_19 = arith.constant dense<0.000000e+00> : vector<8x32xf32>
    %53 = tpu.matmul %52, %1, %cst_19 {dimension_numbers = #tpu.dot_dimension_numbers<[1], [0], [0], [1], [0, 0, 1, 1], [], []>} : vector<8x96xbf16>, vector<96x32xbf16>, vector<8x32xf32> -> vector<8x32xf32>
    %54 = arith.addf %53, %5 : vector<8x32xf32>
    %c0_20 = arith.constant 0 : index
    %c0_21 = arith.constant 0 : index
    %55 = vector.load %arg4[%c0_20, %c0_21] : memref<8x256xf32, #tpu.memory_space<vmem>>, vector<8x32xf32>
    tpu.vector_store %arg4[%c0_20, %c0_21], %54 {strides = array<i32>} : memref<8x256xf32, #tpu.memory_space<vmem>>, vector<8x32xf32>,
    %c0_22 = arith.constant 0 : index
    %c32 = arith.constant 32 : index
    %56 = vector.load %arg0[%c0_22, %c32] : memref<8x256xbf16, #tpu.memory_space<vmem>>, vector<8x32xbf16>
    %57 = tpu.concatenate %56, %52 in 1 : vector<8x32xbf16>, vector<8x96xbf16> -> vector<8x128xbf16>
    %cst_23 = arith.constant dense<0.000000e+00> : vector<8x128xf32>
    %58 = tpu.matmul %57, %0, %cst_23 {dimension_numbers = #tpu.dot_dimension_numbers<[1], [0], [0], [1], [0, 0, 1, 1], [], []>} : vector<8x128xbf16>, vector<128x128xbf16>, vector<8x128xf32> -> vector<8x128xf32>
    %59 = arith.addf %58, %4 : vector<8x128xf32>
    %60 = vector.extract_strided_slice %59 {offsets = [0, 0], sizes = [8, 96], strides = [1, 1]} : vector<8x128xf32> to vector<8x96xf32>
    %61 = arith.negf %60 : vector<8x96xf32>
    %62 = math.exp %61 : vector<8x96xf32>
    %cst_24 = arith.constant 1.000000e+00 : f32
    %63 = vector.broadcast %cst_24 : f32 to vector<8x96xf32>
    %64 = arith.addf %63, %62 : vector<8x96xf32>
    %65 = arith.divf %63, %64 : vector<8x96xf32>
    %66 = vector.extract_strided_slice %59 {offsets = [0, 96], sizes = [8, 32], strides = [1, 1]} : vector<8x128xf32> to vector<8x32xf32>
    %67 = math.tanh %66 : vector<8x32xf32>
    %68 = vector.extract_strided_slice %65 {offsets = [0, 32], sizes = [8, 32], strides = [1, 1]} : vector<8x96xf32> to vector<8x32xf32>
    %69 = arith.mulf %68, %24 : vector<8x32xf32>
    %70 = vector.extract_strided_slice %65 {offsets = [0, 0], sizes = [8, 32], strides = [1, 1]} : vector<8x96xf32> to vector<8x32xf32>
    %71 = arith.mulf %70, %67 : vector<8x32xf32>
    %72 = arith.addf %69, %71 : vector<8x32xf32>
    %73 = vector.extract_strided_slice %65 {offsets = [0, 64], sizes = [8, 32], strides = [1, 1]} : vector<8x96xf32> to vector<8x32xf32>
    %74 = math.tanh %72 : vector<8x32xf32>
    %75 = arith.mulf %73, %74 : vector<8x32xf32>
    %76 = arith.truncf %75 : vector<8x32xf32> to vector<8x32xbf16>
    %cst_25 = arith.constant dense<0.000000e+00> : vector<8x32xf32>
    %77 = tpu.matmul %76, %2, %cst_25 {dimension_numbers = #tpu.dot_dimension_numbers<[1], [0], [0], [1], [0, 0, 1, 1], [], []>} : vector<8x32xbf16>, vector<32x32xbf16>, vector<8x32xf32> -> vector<8x32xf32>
    %cst_26 = arith.constant dense<0xFF800000> : vector<8xf32>
    %78 = vector.multi_reduction <maximumf>, %77, %cst_26 [1] : vector<8x32xf32> to vector<8xf32>
    %79 = vector.shape_cast %78 : vector<8xf32> to vector<8x1xf32>
    %80 = vector.broadcast %79 : vector<8x1xf32> to vector<8x32xf32>
    %81 = arith.subf %77, %80 : vector<8x32xf32>
    %82 = math.exp %81 : vector<8x32xf32>
    %83 = arith.truncf %82 : vector<8x32xf32> to vector<8x32xbf16>
    %cst_27 = arith.constant dense<0.000000e+00> : vector<8x64xf32>
    %84 = tpu.matmul %83, %3, %cst_27 {dimension_numbers = #tpu.dot_dimension_numbers<[1], [0], [0], [1], [0, 0, 1, 1], [], []>} : vector<8x32xbf16>, vector<32x64xbf16>, vector<8x64xf32> -> vector<8x64xf32>
    %85 = vector.extract_strided_slice %82 {offsets = [0, 0], sizes = [8, 16], strides = [1, 1]} : vector<8x32xf32> to vector<8x16xf32>
    %cst_28 = arith.constant dense<0.000000e+00> : vector<8xf32>
    %86 = vector.multi_reduction <add>, %85, %cst_28 [1] : vector<8x16xf32> to vector<8xf32>
    %87 = vector.shape_cast %86 : vector<8xf32> to vector<8x1xf32>
    %88 = tpu.reciprocal %87 {approx = true} : vector<8x1xf32> -> vector<8x1xf32>
    %89 = vector.extract_strided_slice %84 {offsets = [0, 0], sizes = [8, 32], strides = [1, 1]} : vector<8x64xf32> to vector<8x32xf32>
    %90 = vector.broadcast %88 : vector<8x1xf32> to vector<8x32xf32>
    %91 = arith.mulf %89, %90 : vector<8x32xf32>
    %92 = vector.extract_strided_slice %82 {offsets = [0, 16], sizes = [8, 16], strides = [1, 1]} : vector<8x32xf32> to vector<8x16xf32>
    %cst_29 = arith.constant dense<0.000000e+00> : vector<8xf32>
    %93 = vector.multi_reduction <add>, %92, %cst_29 [1] : vector<8x16xf32> to vector<8xf32>
    %94 = vector.shape_cast %93 : vector<8xf32> to vector<8x1xf32>
    %95 = tpu.reciprocal %94 {approx = true} : vector<8x1xf32> -> vector<8x1xf32>
    %96 = vector.extract_strided_slice %84 {offsets = [0, 32], sizes = [8, 32], strides = [1, 1]} : vector<8x64xf32> to vector<8x32xf32>
    %97 = vector.broadcast %95 : vector<8x1xf32> to vector<8x32xf32>
    %98 = arith.mulf %96, %97 : vector<8x32xf32>
    %99 = tpu.concatenate %91, %98, %75 in 1 : vector<8x32xf32>, vector<8x32xf32>, vector<8x32xf32> -> vector<8x96xf32>
    %100 = arith.truncf %99 : vector<8x96xf32> to vector<8x96xbf16>
    %cst_30 = arith.constant dense<0.000000e+00> : vector<8x32xf32>
    %101 = tpu.matmul %100, %1, %cst_30 {dimension_numbers = #tpu.dot_dimension_numbers<[1], [0], [0], [1], [0, 0, 1, 1], [], []>} : vector<8x96xbf16>, vector<96x32xbf16>, vector<8x32xf32> -> vector<8x32xf32>
    %102 = arith.addf %101, %5 : vector<8x32xf32>
    %c0_31 = arith.constant 0 : index
    %c32_32 = arith.constant 32 : index
    %103 = vector.load %arg4[%c0_31, %c32_32] : memref<8x256xf32, #tpu.memory_space<vmem>>, vector<8x32xf32>
    tpu.vector_store %arg4[%c0_31, %c32_32], %102 {strides = array<i32>} : memref<8x256xf32, #tpu.memory_space<vmem>>, vector<8x32xf32>,
    %c0_33 = arith.constant 0 : index
    %c64 = arith.constant 64 : index
    %104 = vector.load %arg0[%c0_33, %c64] : memref<8x256xbf16, #tpu.memory_space<vmem>>, vector<8x32xbf16>
    %105 = tpu.concatenate %104, %100 in 1 : vector<8x32xbf16>, vector<8x96xbf16> -> vector<8x128xbf16>
    %cst_34 = arith.constant dense<0.000000e+00> : vector<8x128xf32>
    %106 = tpu.matmul %105, %0, %cst_34 {dimension_numbers = #tpu.dot_dimension_numbers<[1], [0], [0], [1], [0, 0, 1, 1], [], []>} : vector<8x128xbf16>, vector<128x128xbf16>, vector<8x128xf32> -> vector<8x128xf32>
    %107 = arith.addf %106, %4 : vector<8x128xf32>
    %108 = vector.extract_strided_slice %107 {offsets = [0, 0], sizes = [8, 96], strides = [1, 1]} : vector<8x128xf32> to vector<8x96xf32>
    %109 = arith.negf %108 : vector<8x96xf32>
    %110 = math.exp %109 : vector<8x96xf32>
    %cst_35 = arith.constant 1.000000e+00 : f32
    %111 = vector.broadcast %cst_35 : f32 to vector<8x96xf32>
    %112 = arith.addf %111, %110 : vector<8x96xf32>
    %113 = arith.divf %111, %112 : vector<8x96xf32>
    %114 = vector.extract_strided_slice %107 {offsets = [0, 96], sizes = [8, 32], strides = [1, 1]} : vector<8x128xf32> to vector<8x32xf32>
    %115 = math.tanh %114 : vector<8x32xf32>
    %116 = vector.extract_strided_slice %113 {offsets = [0, 32], sizes = [8, 32], strides = [1, 1]} : vector<8x96xf32> to vector<8x32xf32>
    %117 = arith.mulf %116, %72 : vector<8x32xf32>
    %118 = vector.extract_strided_slice %113 {offsets = [0, 0], sizes = [8, 32], strides = [1, 1]} : vector<8x96xf32> to vector<8x32xf32>
    %119 = arith.mulf %118, %115 : vector<8x32xf32>
    %120 = arith.addf %117, %119 : vector<8x32xf32>
    %121 = vector.extract_strided_slice %113 {offsets = [0, 64], sizes = [8, 32], strides = [1, 1]} : vector<8x96xf32> to vector<8x32xf32>
    %122 = math.tanh %120 : vector<8x32xf32>
    %123 = arith.mulf %121, %122 : vector<8x32xf32>
    %124 = arith.truncf %123 : vector<8x32xf32> to vector<8x32xbf16>
    %cst_36 = arith.constant dense<0.000000e+00> : vector<8x32xf32>
    %125 = tpu.matmul %124, %2, %cst_36 {dimension_numbers = #tpu.dot_dimension_numbers<[1], [0], [0], [1], [0, 0, 1, 1], [], []>} : vector<8x32xbf16>, vector<32x32xbf16>, vector<8x32xf32> -> vector<8x32xf32>
    %cst_37 = arith.constant dense<0xFF800000> : vector<8xf32>
    %126 = vector.multi_reduction <maximumf>, %125, %cst_37 [1] : vector<8x32xf32> to vector<8xf32>
    %127 = vector.shape_cast %126 : vector<8xf32> to vector<8x1xf32>
    %128 = vector.broadcast %127 : vector<8x1xf32> to vector<8x32xf32>
    %129 = arith.subf %125, %128 : vector<8x32xf32>
    %130 = math.exp %129 : vector<8x32xf32>
    %131 = arith.truncf %130 : vector<8x32xf32> to vector<8x32xbf16>
    %cst_38 = arith.constant dense<0.000000e+00> : vector<8x64xf32>
    %132 = tpu.matmul %131, %3, %cst_38 {dimension_numbers = #tpu.dot_dimension_numbers<[1], [0], [0], [1], [0, 0, 1, 1], [], []>} : vector<8x32xbf16>, vector<32x64xbf16>, vector<8x64xf32> -> vector<8x64xf32>
    %133 = vector.extract_strided_slice %130 {offsets = [0, 0], sizes = [8, 16], strides = [1, 1]} : vector<8x32xf32> to vector<8x16xf32>
    %cst_39 = arith.constant dense<0.000000e+00> : vector<8xf32>
    %134 = vector.multi_reduction <add>, %133, %cst_39 [1] : vector<8x16xf32> to vector<8xf32>
    %135 = vector.shape_cast %134 : vector<8xf32> to vector<8x1xf32>
    %136 = tpu.reciprocal %135 {approx = true} : vector<8x1xf32> -> vector<8x1xf32>
    %137 = vector.extract_strided_slice %132 {offsets = [0, 0], sizes = [8, 32], strides = [1, 1]} : vector<8x64xf32> to vector<8x32xf32>
    %138 = vector.broadcast %136 : vector<8x1xf32> to vector<8x32xf32>
    %139 = arith.mulf %137, %138 : vector<8x32xf32>
    %140 = vector.extract_strided_slice %130 {offsets = [0, 16], sizes = [8, 16], strides = [1, 1]} : vector<8x32xf32> to vector<8x16xf32>
    %cst_40 = arith.constant dense<0.000000e+00> : vector<8xf32>
    %141 = vector.multi_reduction <add>, %140, %cst_40 [1] : vector<8x16xf32> to vector<8xf32>
    %142 = vector.shape_cast %141 : vector<8xf32> to vector<8x1xf32>
    %143 = tpu.reciprocal %142 {approx = true} : vector<8x1xf32> -> vector<8x1xf32>
    %144 = vector.extract_strided_slice %132 {offsets = [0, 32], sizes = [8, 32], strides = [1, 1]} : vector<8x64xf32> to vector<8x32xf32>
    %145 = vector.broadcast %143 : vector<8x1xf32> to vector<8x32xf32>
    %146 = arith.mulf %144, %145 : vector<8x32xf32>
    %147 = tpu.concatenate %139, %146, %123 in 1 : vector<8x32xf32>, vector<8x32xf32>, vector<8x32xf32> -> vector<8x96xf32>
    %148 = arith.truncf %147 : vector<8x96xf32> to vector<8x96xbf16>
    %cst_41 = arith.constant dense<0.000000e+00> : vector<8x32xf32>
    %149 = tpu.matmul %148, %1, %cst_41 {dimension_numbers = #tpu.dot_dimension_numbers<[1], [0], [0], [1], [0, 0, 1, 1], [], []>} : vector<8x96xbf16>, vector<96x32xbf16>, vector<8x32xf32> -> vector<8x32xf32>
    %150 = arith.addf %149, %5 : vector<8x32xf32>
    %c0_42 = arith.constant 0 : index
    %c64_43 = arith.constant 64 : index
    %151 = vector.load %arg4[%c0_42, %c64_43] : memref<8x256xf32, #tpu.memory_space<vmem>>, vector<8x32xf32>
    tpu.vector_store %arg4[%c0_42, %c64_43], %150 {strides = array<i32>} : memref<8x256xf32, #tpu.memory_space<vmem>>, vector<8x32xf32>,
    %c0_44 = arith.constant 0 : index
    %c96_45 = arith.constant 96 : index
    %152 = vector.load %arg0[%c0_44, %c96_45] : memref<8x256xbf16, #tpu.memory_space<vmem>>, vector<8x32xbf16>
    %153 = tpu.concatenate %152, %148 in 1 : vector<8x32xbf16>, vector<8x96xbf16> -> vector<8x128xbf16>
    %cst_46 = arith.constant dense<0.000000e+00> : vector<8x128xf32>
    %154 = tpu.matmul %153, %0, %cst_46 {dimension_numbers = #tpu.dot_dimension_numbers<[1], [0], [0], [1], [0, 0, 1, 1], [], []>} : vector<8x128xbf16>, vector<128x128xbf16>, vector<8x128xf32> -> vector<8x128xf32>
    %155 = arith.addf %154, %4 : vector<8x128xf32>
    %156 = vector.extract_strided_slice %155 {offsets = [0, 0], sizes = [8, 96], strides = [1, 1]} : vector<8x128xf32> to vector<8x96xf32>
    %157 = arith.negf %156 : vector<8x96xf32>
    %158 = math.exp %157 : vector<8x96xf32>
    %cst_47 = arith.constant 1.000000e+00 : f32
    %159 = vector.broadcast %cst_47 : f32 to vector<8x96xf32>
    %160 = arith.addf %159, %158 : vector<8x96xf32>
    %161 = arith.divf %159, %160 : vector<8x96xf32>
    %162 = vector.extract_strided_slice %155 {offsets = [0, 96], sizes = [8, 32], strides = [1, 1]} : vector<8x128xf32> to vector<8x32xf32>
    %163 = math.tanh %162 : vector<8x32xf32>
    %164 = vector.extract_strided_slice %161 {offsets = [0, 32], sizes = [8, 32], strides = [1, 1]} : vector<8x96xf32> to vector<8x32xf32>
    %165 = arith.mulf %164, %120 : vector<8x32xf32>
    %166 = vector.extract_strided_slice %161 {offsets = [0, 0], sizes = [8, 32], strides = [1, 1]} : vector<8x96xf32> to vector<8x32xf32>
    %167 = arith.mulf %166, %163 : vector<8x32xf32>
    %168 = arith.addf %165, %167 : vector<8x32xf32>
    %169 = vector.extract_strided_slice %161 {offsets = [0, 64], sizes = [8, 32], strides = [1, 1]} : vector<8x96xf32> to vector<8x32xf32>
    %170 = math.tanh %168 : vector<8x32xf32>
    %171 = arith.mulf %169, %170 : vector<8x32xf32>
    %172 = arith.truncf %171 : vector<8x32xf32> to vector<8x32xbf16>
    %cst_48 = arith.constant dense<0.000000e+00> : vector<8x32xf32>
    %173 = tpu.matmul %172, %2, %cst_48 {dimension_numbers = #tpu.dot_dimension_numbers<[1], [0], [0], [1], [0, 0, 1, 1], [], []>} : vector<8x32xbf16>, vector<32x32xbf16>, vector<8x32xf32> -> vector<8x32xf32>
    %cst_49 = arith.constant dense<0xFF800000> : vector<8xf32>
    %174 = vector.multi_reduction <maximumf>, %173, %cst_49 [1] : vector<8x32xf32> to vector<8xf32>
    %175 = vector.shape_cast %174 : vector<8xf32> to vector<8x1xf32>
    %176 = vector.broadcast %175 : vector<8x1xf32> to vector<8x32xf32>
    %177 = arith.subf %173, %176 : vector<8x32xf32>
    %178 = math.exp %177 : vector<8x32xf32>
    %179 = arith.truncf %178 : vector<8x32xf32> to vector<8x32xbf16>
    %cst_50 = arith.constant dense<0.000000e+00> : vector<8x64xf32>
    %180 = tpu.matmul %179, %3, %cst_50 {dimension_numbers = #tpu.dot_dimension_numbers<[1], [0], [0], [1], [0, 0, 1, 1], [], []>} : vector<8x32xbf16>, vector<32x64xbf16>, vector<8x64xf32> -> vector<8x64xf32>
    %181 = vector.extract_strided_slice %178 {offsets = [0, 0], sizes = [8, 16], strides = [1, 1]} : vector<8x32xf32> to vector<8x16xf32>
    %cst_51 = arith.constant dense<0.000000e+00> : vector<8xf32>
    %182 = vector.multi_reduction <add>, %181, %cst_51 [1] : vector<8x16xf32> to vector<8xf32>
    %183 = vector.shape_cast %182 : vector<8xf32> to vector<8x1xf32>
    %184 = tpu.reciprocal %183 {approx = true} : vector<8x1xf32> -> vector<8x1xf32>
    %185 = vector.extract_strided_slice %180 {offsets = [0, 0], sizes = [8, 32], strides = [1, 1]} : vector<8x64xf32> to vector<8x32xf32>
    %186 = vector.broadcast %184 : vector<8x1xf32> to vector<8x32xf32>
    %187 = arith.mulf %185, %186 : vector<8x32xf32>
    %188 = vector.extract_strided_slice %178 {offsets = [0, 16], sizes = [8, 16], strides = [1, 1]} : vector<8x32xf32> to vector<8x16xf32>
    %cst_52 = arith.constant dense<0.000000e+00> : vector<8xf32>
    %189 = vector.multi_reduction <add>, %188, %cst_52 [1] : vector<8x16xf32> to vector<8xf32>
    %190 = vector.shape_cast %189 : vector<8xf32> to vector<8x1xf32>
    %191 = tpu.reciprocal %190 {approx = true} : vector<8x1xf32> -> vector<8x1xf32>
    %192 = vector.extract_strided_slice %180 {offsets = [0, 32], sizes = [8, 32], strides = [1, 1]} : vector<8x64xf32> to vector<8x32xf32>
    %193 = vector.broadcast %191 : vector<8x1xf32> to vector<8x32xf32>
    %194 = arith.mulf %192, %193 : vector<8x32xf32>
    %195 = tpu.concatenate %187, %194, %171 in 1 : vector<8x32xf32>, vector<8x32xf32>, vector<8x32xf32> -> vector<8x96xf32>
    %196 = arith.truncf %195 : vector<8x96xf32> to vector<8x96xbf16>
    %cst_53 = arith.constant dense<0.000000e+00> : vector<8x32xf32>
    %197 = tpu.matmul %196, %1, %cst_53 {dimension_numbers = #tpu.dot_dimension_numbers<[1], [0], [0], [1], [0, 0, 1, 1], [], []>} : vector<8x96xbf16>, vector<96x32xbf16>, vector<8x32xf32> -> vector<8x32xf32>
    %198 = arith.addf %197, %5 : vector<8x32xf32>
    %c0_54 = arith.constant 0 : index
    %c96_55 = arith.constant 96 : index
    %199 = vector.load %arg4[%c0_54, %c96_55] : memref<8x256xf32, #tpu.memory_space<vmem>>, vector<8x32xf32>
    tpu.vector_store %arg4[%c0_54, %c96_55], %198 {strides = array<i32>} : memref<8x256xf32, #tpu.memory_space<vmem>>, vector<8x32xf32>,
    %c0_56 = arith.constant 0 : index
    %c128_57 = arith.constant 128 : index
    %200 = vector.load %arg0[%c0_56, %c128_57] : memref<8x256xbf16, #tpu.memory_space<vmem>>, vector<8x32xbf16>
    %201 = tpu.concatenate %200, %196 in 1 : vector<8x32xbf16>, vector<8x96xbf16> -> vector<8x128xbf16>
    %cst_58 = arith.constant dense<0.000000e+00> : vector<8x128xf32>
    %202 = tpu.matmul %201, %0, %cst_58 {dimension_numbers = #tpu.dot_dimension_numbers<[1], [0], [0], [1], [0, 0, 1, 1], [], []>} : vector<8x128xbf16>, vector<128x128xbf16>, vector<8x128xf32> -> vector<8x128xf32>
    %203 = arith.addf %202, %4 : vector<8x128xf32>
    %204 = vector.extract_strided_slice %203 {offsets = [0, 0], sizes = [8, 96], strides = [1, 1]} : vector<8x128xf32> to vector<8x96xf32>
    %205 = arith.negf %204 : vector<8x96xf32>
    %206 = math.exp %205 : vector<8x96xf32>
    %cst_59 = arith.constant 1.000000e+00 : f32
    %207 = vector.broadcast %cst_59 : f32 to vector<8x96xf32>
    %208 = arith.addf %207, %206 : vector<8x96xf32>
    %209 = arith.divf %207, %208 : vector<8x96xf32>
    %210 = vector.extract_strided_slice %203 {offsets = [0, 96], sizes = [8, 32], strides = [1, 1]} : vector<8x128xf32> to vector<8x32xf32>
    %211 = math.tanh %210 : vector<8x32xf32>
    %212 = vector.extract_strided_slice %209 {offsets = [0, 32], sizes = [8, 32], strides = [1, 1]} : vector<8x96xf32> to vector<8x32xf32>
    %213 = arith.mulf %212, %168 : vector<8x32xf32>
    %214 = vector.extract_strided_slice %209 {offsets = [0, 0], sizes = [8, 32], strides = [1, 1]} : vector<8x96xf32> to vector<8x32xf32>
    %215 = arith.mulf %214, %211 : vector<8x32xf32>
    %216 = arith.addf %213, %215 : vector<8x32xf32>
    %217 = vector.extract_strided_slice %209 {offsets = [0, 64], sizes = [8, 32], strides = [1, 1]} : vector<8x96xf32> to vector<8x32xf32>
    %218 = math.tanh %216 : vector<8x32xf32>
    %219 = arith.mulf %217, %218 : vector<8x32xf32>
    %220 = arith.truncf %219 : vector<8x32xf32> to vector<8x32xbf16>
    %cst_60 = arith.constant dense<0.000000e+00> : vector<8x32xf32>
    %221 = tpu.matmul %220, %2, %cst_60 {dimension_numbers = #tpu.dot_dimension_numbers<[1], [0], [0], [1], [0, 0, 1, 1], [], []>} : vector<8x32xbf16>, vector<32x32xbf16>, vector<8x32xf32> -> vector<8x32xf32>
    %cst_61 = arith.constant dense<0xFF800000> : vector<8xf32>
    %222 = vector.multi_reduction <maximumf>, %221, %cst_61 [1] : vector<8x32xf32> to vector<8xf32>
    %223 = vector.shape_cast %222 : vector<8xf32> to vector<8x1xf32>
    %224 = vector.broadcast %223 : vector<8x1xf32> to vector<8x32xf32>
    %225 = arith.subf %221, %224 : vector<8x32xf32>
    %226 = math.exp %225 : vector<8x32xf32>
    %227 = arith.truncf %226 : vector<8x32xf32> to vector<8x32xbf16>
    %cst_62 = arith.constant dense<0.000000e+00> : vector<8x64xf32>
    %228 = tpu.matmul %227, %3, %cst_62 {dimension_numbers = #tpu.dot_dimension_numbers<[1], [0], [0], [1], [0, 0, 1, 1], [], []>} : vector<8x32xbf16>, vector<32x64xbf16>, vector<8x64xf32> -> vector<8x64xf32>
    %229 = vector.extract_strided_slice %226 {offsets = [0, 0], sizes = [8, 16], strides = [1, 1]} : vector<8x32xf32> to vector<8x16xf32>
    %cst_63 = arith.constant dense<0.000000e+00> : vector<8xf32>
    %230 = vector.multi_reduction <add>, %229, %cst_63 [1] : vector<8x16xf32> to vector<8xf32>
    %231 = vector.shape_cast %230 : vector<8xf32> to vector<8x1xf32>
    %232 = tpu.reciprocal %231 {approx = true} : vector<8x1xf32> -> vector<8x1xf32>
    %233 = vector.extract_strided_slice %228 {offsets = [0, 0], sizes = [8, 32], strides = [1, 1]} : vector<8x64xf32> to vector<8x32xf32>
    %234 = vector.broadcast %232 : vector<8x1xf32> to vector<8x32xf32>
    %235 = arith.mulf %233, %234 : vector<8x32xf32>
    %236 = vector.extract_strided_slice %226 {offsets = [0, 16], sizes = [8, 16], strides = [1, 1]} : vector<8x32xf32> to vector<8x16xf32>
    %cst_64 = arith.constant dense<0.000000e+00> : vector<8xf32>
    %237 = vector.multi_reduction <add>, %236, %cst_64 [1] : vector<8x16xf32> to vector<8xf32>
    %238 = vector.shape_cast %237 : vector<8xf32> to vector<8x1xf32>
    %239 = tpu.reciprocal %238 {approx = true} : vector<8x1xf32> -> vector<8x1xf32>
    %240 = vector.extract_strided_slice %228 {offsets = [0, 32], sizes = [8, 32], strides = [1, 1]} : vector<8x64xf32> to vector<8x32xf32>
    %241 = vector.broadcast %239 : vector<8x1xf32> to vector<8x32xf32>
    %242 = arith.mulf %240, %241 : vector<8x32xf32>
    %243 = tpu.concatenate %235, %242, %219 in 1 : vector<8x32xf32>, vector<8x32xf32>, vector<8x32xf32> -> vector<8x96xf32>
    %244 = arith.truncf %243 : vector<8x96xf32> to vector<8x96xbf16>
    %cst_65 = arith.constant dense<0.000000e+00> : vector<8x32xf32>
    %245 = tpu.matmul %244, %1, %cst_65 {dimension_numbers = #tpu.dot_dimension_numbers<[1], [0], [0], [1], [0, 0, 1, 1], [], []>} : vector<8x96xbf16>, vector<96x32xbf16>, vector<8x32xf32> -> vector<8x32xf32>
    %246 = arith.addf %245, %5 : vector<8x32xf32>
    %c0_66 = arith.constant 0 : index
    %c128_67 = arith.constant 128 : index
    %247 = vector.load %arg4[%c0_66, %c128_67] : memref<8x256xf32, #tpu.memory_space<vmem>>, vector<8x32xf32>
    tpu.vector_store %arg4[%c0_66, %c128_67], %246 {strides = array<i32>} : memref<8x256xf32, #tpu.memory_space<vmem>>, vector<8x32xf32>,
    %c0_68 = arith.constant 0 : index
    %c160 = arith.constant 160 : index
    %248 = vector.load %arg0[%c0_68, %c160] : memref<8x256xbf16, #tpu.memory_space<vmem>>, vector<8x32xbf16>
    %249 = tpu.concatenate %248, %244 in 1 : vector<8x32xbf16>, vector<8x96xbf16> -> vector<8x128xbf16>
    %cst_69 = arith.constant dense<0.000000e+00> : vector<8x128xf32>
    %250 = tpu.matmul %249, %0, %cst_69 {dimension_numbers = #tpu.dot_dimension_numbers<[1], [0], [0], [1], [0, 0, 1, 1], [], []>} : vector<8x128xbf16>, vector<128x128xbf16>, vector<8x128xf32> -> vector<8x128xf32>
    %251 = arith.addf %250, %4 : vector<8x128xf32>
    %252 = vector.extract_strided_slice %251 {offsets = [0, 0], sizes = [8, 96], strides = [1, 1]} : vector<8x128xf32> to vector<8x96xf32>
    %253 = arith.negf %252 : vector<8x96xf32>
    %254 = math.exp %253 : vector<8x96xf32>
    %cst_70 = arith.constant 1.000000e+00 : f32
    %255 = vector.broadcast %cst_70 : f32 to vector<8x96xf32>
    %256 = arith.addf %255, %254 : vector<8x96xf32>
    %257 = arith.divf %255, %256 : vector<8x96xf32>
    %258 = vector.extract_strided_slice %251 {offsets = [0, 96], sizes = [8, 32], strides = [1, 1]} : vector<8x128xf32> to vector<8x32xf32>
    %259 = math.tanh %258 : vector<8x32xf32>
    %260 = vector.extract_strided_slice %257 {offsets = [0, 32], sizes = [8, 32], strides = [1, 1]} : vector<8x96xf32> to vector<8x32xf32>
    %261 = arith.mulf %260, %216 : vector<8x32xf32>
    %262 = vector.extract_strided_slice %257 {offsets = [0, 0], sizes = [8, 32], strides = [1, 1]} : vector<8x96xf32> to vector<8x32xf32>
    %263 = arith.mulf %262, %259 : vector<8x32xf32>
    %264 = arith.addf %261, %263 : vector<8x32xf32>
    %265 = vector.extract_strided_slice %257 {offsets = [0, 64], sizes = [8, 32], strides = [1, 1]} : vector<8x96xf32> to vector<8x32xf32>
    %266 = math.tanh %264 : vector<8x32xf32>
    %267 = arith.mulf %265, %266 : vector<8x32xf32>
    %268 = arith.truncf %267 : vector<8x32xf32> to vector<8x32xbf16>
    %cst_71 = arith.constant dense<0.000000e+00> : vector<8x32xf32>
    %269 = tpu.matmul %268, %2, %cst_71 {dimension_numbers = #tpu.dot_dimension_numbers<[1], [0], [0], [1], [0, 0, 1, 1], [], []>} : vector<8x32xbf16>, vector<32x32xbf16>, vector<8x32xf32> -> vector<8x32xf32>
    %cst_72 = arith.constant dense<0xFF800000> : vector<8xf32>
    %270 = vector.multi_reduction <maximumf>, %269, %cst_72 [1] : vector<8x32xf32> to vector<8xf32>
    %271 = vector.shape_cast %270 : vector<8xf32> to vector<8x1xf32>
    %272 = vector.broadcast %271 : vector<8x1xf32> to vector<8x32xf32>
    %273 = arith.subf %269, %272 : vector<8x32xf32>
    %274 = math.exp %273 : vector<8x32xf32>
    %275 = arith.truncf %274 : vector<8x32xf32> to vector<8x32xbf16>
    %cst_73 = arith.constant dense<0.000000e+00> : vector<8x64xf32>
    %276 = tpu.matmul %275, %3, %cst_73 {dimension_numbers = #tpu.dot_dimension_numbers<[1], [0], [0], [1], [0, 0, 1, 1], [], []>} : vector<8x32xbf16>, vector<32x64xbf16>, vector<8x64xf32> -> vector<8x64xf32>
    %277 = vector.extract_strided_slice %274 {offsets = [0, 0], sizes = [8, 16], strides = [1, 1]} : vector<8x32xf32> to vector<8x16xf32>
    %cst_74 = arith.constant dense<0.000000e+00> : vector<8xf32>
    %278 = vector.multi_reduction <add>, %277, %cst_74 [1] : vector<8x16xf32> to vector<8xf32>
    %279 = vector.shape_cast %278 : vector<8xf32> to vector<8x1xf32>
    %280 = tpu.reciprocal %279 {approx = true} : vector<8x1xf32> -> vector<8x1xf32>
    %281 = vector.extract_strided_slice %276 {offsets = [0, 0], sizes = [8, 32], strides = [1, 1]} : vector<8x64xf32> to vector<8x32xf32>
    %282 = vector.broadcast %280 : vector<8x1xf32> to vector<8x32xf32>
    %283 = arith.mulf %281, %282 : vector<8x32xf32>
    %284 = vector.extract_strided_slice %274 {offsets = [0, 16], sizes = [8, 16], strides = [1, 1]} : vector<8x32xf32> to vector<8x16xf32>
    %cst_75 = arith.constant dense<0.000000e+00> : vector<8xf32>
    %285 = vector.multi_reduction <add>, %284, %cst_75 [1] : vector<8x16xf32> to vector<8xf32>
    %286 = vector.shape_cast %285 : vector<8xf32> to vector<8x1xf32>
    %287 = tpu.reciprocal %286 {approx = true} : vector<8x1xf32> -> vector<8x1xf32>
    %288 = vector.extract_strided_slice %276 {offsets = [0, 32], sizes = [8, 32], strides = [1, 1]} : vector<8x64xf32> to vector<8x32xf32>
    %289 = vector.broadcast %287 : vector<8x1xf32> to vector<8x32xf32>
    %290 = arith.mulf %288, %289 : vector<8x32xf32>
    %291 = tpu.concatenate %283, %290, %267 in 1 : vector<8x32xf32>, vector<8x32xf32>, vector<8x32xf32> -> vector<8x96xf32>
    %292 = arith.truncf %291 : vector<8x96xf32> to vector<8x96xbf16>
    %cst_76 = arith.constant dense<0.000000e+00> : vector<8x32xf32>
    %293 = tpu.matmul %292, %1, %cst_76 {dimension_numbers = #tpu.dot_dimension_numbers<[1], [0], [0], [1], [0, 0, 1, 1], [], []>} : vector<8x96xbf16>, vector<96x32xbf16>, vector<8x32xf32> -> vector<8x32xf32>
    %294 = arith.addf %293, %5 : vector<8x32xf32>
    %c0_77 = arith.constant 0 : index
    %c160_78 = arith.constant 160 : index
    %295 = vector.load %arg4[%c0_77, %c160_78] : memref<8x256xf32, #tpu.memory_space<vmem>>, vector<8x32xf32>
    tpu.vector_store %arg4[%c0_77, %c160_78], %294 {strides = array<i32>} : memref<8x256xf32, #tpu.memory_space<vmem>>, vector<8x32xf32>,
    %c0_79 = arith.constant 0 : index
    %c192 = arith.constant 192 : index
    %296 = vector.load %arg0[%c0_79, %c192] : memref<8x256xbf16, #tpu.memory_space<vmem>>, vector<8x32xbf16>
    %297 = tpu.concatenate %296, %292 in 1 : vector<8x32xbf16>, vector<8x96xbf16> -> vector<8x128xbf16>
    %cst_80 = arith.constant dense<0.000000e+00> : vector<8x128xf32>
    %298 = tpu.matmul %297, %0, %cst_80 {dimension_numbers = #tpu.dot_dimension_numbers<[1], [0], [0], [1], [0, 0, 1, 1], [], []>} : vector<8x128xbf16>, vector<128x128xbf16>, vector<8x128xf32> -> vector<8x128xf32>
    %299 = arith.addf %298, %4 : vector<8x128xf32>
    %300 = vector.extract_strided_slice %299 {offsets = [0, 0], sizes = [8, 96], strides = [1, 1]} : vector<8x128xf32> to vector<8x96xf32>
    %301 = arith.negf %300 : vector<8x96xf32>
    %302 = math.exp %301 : vector<8x96xf32>
    %cst_81 = arith.constant 1.000000e+00 : f32
    %303 = vector.broadcast %cst_81 : f32 to vector<8x96xf32>
    %304 = arith.addf %303, %302 : vector<8x96xf32>
    %305 = arith.divf %303, %304 : vector<8x96xf32>
    %306 = vector.extract_strided_slice %299 {offsets = [0, 96], sizes = [8, 32], strides = [1, 1]} : vector<8x128xf32> to vector<8x32xf32>
    %307 = math.tanh %306 : vector<8x32xf32>
    %308 = vector.extract_strided_slice %305 {offsets = [0, 32], sizes = [8, 32], strides = [1, 1]} : vector<8x96xf32> to vector<8x32xf32>
    %309 = arith.mulf %308, %264 : vector<8x32xf32>
    %310 = vector.extract_strided_slice %305 {offsets = [0, 0], sizes = [8, 32], strides = [1, 1]} : vector<8x96xf32> to vector<8x32xf32>
    %311 = arith.mulf %310, %307 : vector<8x32xf32>
    %312 = arith.addf %309, %311 : vector<8x32xf32>
    %313 = vector.extract_strided_slice %305 {offsets = [0, 64], sizes = [8, 32], strides = [1, 1]} : vector<8x96xf32> to vector<8x32xf32>
    %314 = math.tanh %312 : vector<8x32xf32>
    %315 = arith.mulf %313, %314 : vector<8x32xf32>
    %316 = arith.truncf %315 : vector<8x32xf32> to vector<8x32xbf16>
    %cst_82 = arith.constant dense<0.000000e+00> : vector<8x32xf32>
    %317 = tpu.matmul %316, %2, %cst_82 {dimension_numbers = #tpu.dot_dimension_numbers<[1], [0], [0], [1], [0, 0, 1, 1], [], []>} : vector<8x32xbf16>, vector<32x32xbf16>, vector<8x32xf32> -> vector<8x32xf32>
    %cst_83 = arith.constant dense<0xFF800000> : vector<8xf32>
    %318 = vector.multi_reduction <maximumf>, %317, %cst_83 [1] : vector<8x32xf32> to vector<8xf32>
    %319 = vector.shape_cast %318 : vector<8xf32> to vector<8x1xf32>
    %320 = vector.broadcast %319 : vector<8x1xf32> to vector<8x32xf32>
    %321 = arith.subf %317, %320 : vector<8x32xf32>
    %322 = math.exp %321 : vector<8x32xf32>
    %323 = arith.truncf %322 : vector<8x32xf32> to vector<8x32xbf16>
    %cst_84 = arith.constant dense<0.000000e+00> : vector<8x64xf32>
    %324 = tpu.matmul %323, %3, %cst_84 {dimension_numbers = #tpu.dot_dimension_numbers<[1], [0], [0], [1], [0, 0, 1, 1], [], []>} : vector<8x32xbf16>, vector<32x64xbf16>, vector<8x64xf32> -> vector<8x64xf32>
    %325 = vector.extract_strided_slice %322 {offsets = [0, 0], sizes = [8, 16], strides = [1, 1]} : vector<8x32xf32> to vector<8x16xf32>
    %cst_85 = arith.constant dense<0.000000e+00> : vector<8xf32>
    %326 = vector.multi_reduction <add>, %325, %cst_85 [1] : vector<8x16xf32> to vector<8xf32>
    %327 = vector.shape_cast %326 : vector<8xf32> to vector<8x1xf32>
    %328 = tpu.reciprocal %327 {approx = true} : vector<8x1xf32> -> vector<8x1xf32>
    %329 = vector.extract_strided_slice %324 {offsets = [0, 0], sizes = [8, 32], strides = [1, 1]} : vector<8x64xf32> to vector<8x32xf32>
    %330 = vector.broadcast %328 : vector<8x1xf32> to vector<8x32xf32>
    %331 = arith.mulf %329, %330 : vector<8x32xf32>
    %332 = vector.extract_strided_slice %322 {offsets = [0, 16], sizes = [8, 16], strides = [1, 1]} : vector<8x32xf32> to vector<8x16xf32>
    %cst_86 = arith.constant dense<0.000000e+00> : vector<8xf32>
    %333 = vector.multi_reduction <add>, %332, %cst_86 [1] : vector<8x16xf32> to vector<8xf32>
    %334 = vector.shape_cast %333 : vector<8xf32> to vector<8x1xf32>
    %335 = tpu.reciprocal %334 {approx = true} : vector<8x1xf32> -> vector<8x1xf32>
    %336 = vector.extract_strided_slice %324 {offsets = [0, 32], sizes = [8, 32], strides = [1, 1]} : vector<8x64xf32> to vector<8x32xf32>
    %337 = vector.broadcast %335 : vector<8x1xf32> to vector<8x32xf32>
    %338 = arith.mulf %336, %337 : vector<8x32xf32>
    %339 = tpu.concatenate %331, %338, %315 in 1 : vector<8x32xf32>, vector<8x32xf32>, vector<8x32xf32> -> vector<8x96xf32>
    %340 = arith.truncf %339 : vector<8x96xf32> to vector<8x96xbf16>
    %cst_87 = arith.constant dense<0.000000e+00> : vector<8x32xf32>
    %341 = tpu.matmul %340, %1, %cst_87 {dimension_numbers = #tpu.dot_dimension_numbers<[1], [0], [0], [1], [0, 0, 1, 1], [], []>} : vector<8x96xbf16>, vector<96x32xbf16>, vector<8x32xf32> -> vector<8x32xf32>
    %342 = arith.addf %341, %5 : vector<8x32xf32>
    %c0_88 = arith.constant 0 : index
    %c192_89 = arith.constant 192 : index
    %343 = vector.load %arg4[%c0_88, %c192_89] : memref<8x256xf32, #tpu.memory_space<vmem>>, vector<8x32xf32>
    tpu.vector_store %arg4[%c0_88, %c192_89], %342 {strides = array<i32>} : memref<8x256xf32, #tpu.memory_space<vmem>>, vector<8x32xf32>,
    %c0_90 = arith.constant 0 : index
    %c224 = arith.constant 224 : index
    %344 = vector.load %arg0[%c0_90, %c224] : memref<8x256xbf16, #tpu.memory_space<vmem>>, vector<8x32xbf16>
    %345 = tpu.concatenate %344, %340 in 1 : vector<8x32xbf16>, vector<8x96xbf16> -> vector<8x128xbf16>
    %cst_91 = arith.constant dense<0.000000e+00> : vector<8x128xf32>
    %346 = tpu.matmul %345, %0, %cst_91 {dimension_numbers = #tpu.dot_dimension_numbers<[1], [0], [0], [1], [0, 0, 1, 1], [], []>} : vector<8x128xbf16>, vector<128x128xbf16>, vector<8x128xf32> -> vector<8x128xf32>
    %347 = arith.addf %346, %4 : vector<8x128xf32>
    %348 = vector.extract_strided_slice %347 {offsets = [0, 0], sizes = [8, 96], strides = [1, 1]} : vector<8x128xf32> to vector<8x96xf32>
    %349 = arith.negf %348 : vector<8x96xf32>
    %350 = math.exp %349 : vector<8x96xf32>
    %cst_92 = arith.constant 1.000000e+00 : f32
    %351 = vector.broadcast %cst_92 : f32 to vector<8x96xf32>
    %352 = arith.addf %351, %350 : vector<8x96xf32>
    %353 = arith.divf %351, %352 : vector<8x96xf32>
    %354 = vector.extract_strided_slice %347 {offsets = [0, 96], sizes = [8, 32], strides = [1, 1]} : vector<8x128xf32> to vector<8x32xf32>
    %355 = math.tanh %354 : vector<8x32xf32>
    %356 = vector.extract_strided_slice %353 {offsets = [0, 32], sizes = [8, 32], strides = [1, 1]} : vector<8x96xf32> to vector<8x32xf32>
    %357 = arith.mulf %356, %312 : vector<8x32xf32>
    %358 = vector.extract_strided_slice %353 {offsets = [0, 0], sizes = [8, 32], strides = [1, 1]} : vector<8x96xf32> to vector<8x32xf32>
    %359 = arith.mulf %358, %355 : vector<8x32xf32>
    %360 = arith.addf %357, %359 : vector<8x32xf32>
    %361 = vector.extract_strided_slice %353 {offsets = [0, 64], sizes = [8, 32], strides = [1, 1]} : vector<8x96xf32> to vector<8x32xf32>
    %362 = math.tanh %360 : vector<8x32xf32>
    %363 = arith.mulf %361, %362 : vector<8x32xf32>
    %364 = arith.truncf %363 : vector<8x32xf32> to vector<8x32xbf16>
    %cst_93 = arith.constant dense<0.000000e+00> : vector<8x32xf32>
    %365 = tpu.matmul %364, %2, %cst_93 {dimension_numbers = #tpu.dot_dimension_numbers<[1], [0], [0], [1], [0, 0, 1, 1], [], []>} : vector<8x32xbf16>, vector<32x32xbf16>, vector<8x32xf32> -> vector<8x32xf32>
    %cst_94 = arith.constant dense<0xFF800000> : vector<8xf32>
    %366 = vector.multi_reduction <maximumf>, %365, %cst_94 [1] : vector<8x32xf32> to vector<8xf32>
    %367 = vector.shape_cast %366 : vector<8xf32> to vector<8x1xf32>
    %368 = vector.broadcast %367 : vector<8x1xf32> to vector<8x32xf32>
    %369 = arith.subf %365, %368 : vector<8x32xf32>
    %370 = math.exp %369 : vector<8x32xf32>
    %371 = arith.truncf %370 : vector<8x32xf32> to vector<8x32xbf16>
    %cst_95 = arith.constant dense<0.000000e+00> : vector<8x64xf32>
    %372 = tpu.matmul %371, %3, %cst_95 {dimension_numbers = #tpu.dot_dimension_numbers<[1], [0], [0], [1], [0, 0, 1, 1], [], []>} : vector<8x32xbf16>, vector<32x64xbf16>, vector<8x64xf32> -> vector<8x64xf32>
    %373 = vector.extract_strided_slice %370 {offsets = [0, 0], sizes = [8, 16], strides = [1, 1]} : vector<8x32xf32> to vector<8x16xf32>
    %cst_96 = arith.constant dense<0.000000e+00> : vector<8xf32>
    %374 = vector.multi_reduction <add>, %373, %cst_96 [1] : vector<8x16xf32> to vector<8xf32>
    %375 = vector.shape_cast %374 : vector<8xf32> to vector<8x1xf32>
    %376 = tpu.reciprocal %375 {approx = true} : vector<8x1xf32> -> vector<8x1xf32>
    %377 = vector.extract_strided_slice %372 {offsets = [0, 0], sizes = [8, 32], strides = [1, 1]} : vector<8x64xf32> to vector<8x32xf32>
    %378 = vector.broadcast %376 : vector<8x1xf32> to vector<8x32xf32>
    %379 = arith.mulf %377, %378 : vector<8x32xf32>
    %380 = vector.extract_strided_slice %370 {offsets = [0, 16], sizes = [8, 16], strides = [1, 1]} : vector<8x32xf32> to vector<8x16xf32>
    %cst_97 = arith.constant dense<0.000000e+00> : vector<8xf32>
    %381 = vector.multi_reduction <add>, %380, %cst_97 [1] : vector<8x16xf32> to vector<8xf32>
    %382 = vector.shape_cast %381 : vector<8xf32> to vector<8x1xf32>
    %383 = tpu.reciprocal %382 {approx = true} : vector<8x1xf32> -> vector<8x1xf32>
    %384 = vector.extract_strided_slice %372 {offsets = [0, 32], sizes = [8, 32], strides = [1, 1]} : vector<8x64xf32> to vector<8x32xf32>
    %385 = vector.broadcast %383 : vector<8x1xf32> to vector<8x32xf32>
    %386 = arith.mulf %384, %385 : vector<8x32xf32>
    %387 = tpu.concatenate %379, %386, %363 in 1 : vector<8x32xf32>, vector<8x32xf32>, vector<8x32xf32> -> vector<8x96xf32>
    %388 = arith.truncf %387 : vector<8x96xf32> to vector<8x96xbf16>
    %cst_98 = arith.constant dense<0.000000e+00> : vector<8x32xf32>
    %389 = tpu.matmul %388, %1, %cst_98 {dimension_numbers = #tpu.dot_dimension_numbers<[1], [0], [0], [1], [0, 0, 1, 1], [], []>} : vector<8x96xbf16>, vector<96x32xbf16>, vector<8x32xf32> -> vector<8x32xf32>
    %390 = arith.addf %389, %5 : vector<8x32xf32>
    %c0_99 = arith.constant 0 : index
    %c224_100 = arith.constant 224 : index
    %391 = vector.load %arg4[%c0_99, %c224_100] : memref<8x256xf32, #tpu.memory_space<vmem>>, vector<8x32xf32>
    tpu.vector_store %arg4[%c0_99, %c224_100], %390 {strides = array<i32>} : memref<8x256xf32, #tpu.memory_space<vmem>>, vector<8x32xf32>,
    %c0_101 = arith.constant 0 : index
    %c0_102 = arith.constant 0 : index
    %392 = vector.load %arg5[%c0_101, %c0_102] : memref<8x32xf32, #tpu.memory_space<vmem>>, vector<8x32xf32>
    tpu.vector_store %arg5[%c0_101, %c0_102], %363 {strides = array<i32>} : memref<8x32xf32, #tpu.memory_space<vmem>>, vector<8x32xf32>,
    %c0_103 = arith.constant 0 : index
    %c0_104 = arith.constant 0 : index
    %393 = vector.load %arg6[%c0_103, %c0_104] : memref<8x32xf32, #tpu.memory_space<vmem>>, vector<8x32xf32>
    tpu.vector_store %arg6[%c0_103, %c0_104], %360 {strides = array<i32>} : memref<8x32xf32, #tpu.memory_space<vmem>>, vector<8x32xf32>,
    return
  }
}

</mosaic_0001>

<bundles_post_ra>
// kernel: tpu_custom_call.1
= control target key start
LH: loop header
LB: loop body
LE: loop exit
PB: predicated region body
PF: predicated region fallthrough
CT: control target
= control target key end

     0   :  { %12 = vsyncpa [#allocation3], 0  ;;  %v2996_v1 = vmov 0.0   ;;  %vm2997_vm0 = vmmov 0   ;;  %s3843_s0 = inlined_call_operand.vmem [shape: bf16[8,256], index: 0, kind: input, shape index: {}]   ;;  %s3844_s1 = inlined_call_operand.vmem [shape: bf16[128,128], index: 1, kind: input, shape index: {}]   ;;  %s3845_s2 = inlined_call_operand.vmem [shape: bf16[160,64], index: 2, kind: input, shape index: {}]   ;;  %s3846_s3 = inlined_call_operand.vmem [shape: f32[8,160], index: 3, kind: input, shape index: {}]   ;;  %s3847_s4 = inlined_call_operand.hbm [shape: f32[8,256], index: 4, kind: output, shape index: {0}]   ;;  %s3848_s5 = inlined_call_operand.hbm [shape: f32[8,32], index: 5, kind: output, shape index: {1}]   ;;  %s3849_s6 = inlined_call_operand.hbm [shape: f32[8,32], index: 6, kind: output, shape index: {2}]  }
   0x1   :  { %v3043_v0 = vld [vmem:[%s3844_s1 + $0x38] sm:$0xff]   ;;  %2351 = vmatprep.subr.bf16.mxu0 %v2996_v1  ;;  %2379 = vmatprep.subr.bf16.mxu1 %v2996_v1  ;;  %v3051_v2 = vld [vmem:[%s3844_s1 + $0x30] sm:$0xff]   ;;  %v3062_v3 = vld [vmem:[%s3844_s1 + $0x28] sm:$0xff]  }
   0x2   :  { %2352 = vmatpush3.bf16.msra.mxu0 %v3043_v0  ;;  %2367 = vmatprep.mubr.msk.bf16.mxu0 %vm2997_vm0, %v2996_v1  ;;  %v3068_v4 = vld [vmem:[%s3844_s1 + $0x20] sm:$0xff]   ;;  %v3075_v5 = vld [vmem:[%s3844_s1 + $0x18] sm:$0xff]  }
   0x3   :  { %2353 = vmatprep.subr.bf16.mxu0 %v2996_v1  ;;  %2383 = vmatprep.mubr.msk.bf16.mxu1 %vm2997_vm0, %v2996_v1 }
   0x6   :  { %2354 = vmatpush3.bf16.msra.mxu0 %v3051_v2 }
   0x7   :  { %2355 = vmatprep.subr.bf16.mxu0 %v2996_v1 }
   0xa   :  { %2356 = vmatpush3.bf16.msra.mxu0 %v3062_v3 }
   0xb   :  { %2357 = vmatprep.subr.bf16.mxu0 %v2996_v1 }
   0xe   :  { %2358 = vmatpush3.bf16.msra.mxu0 %v3068_v4 }
   0xf   :  { %2359 = vmatprep.subr.bf16.mxu0 %v2996_v1 }
  0x10   :  { %13 = vsyncpa [#allocation5], 0  ;;  %v3083_v6 = vld [vmem:[%s3844_s1 + $0x10] sm:$0xff]   ;;  %v3090_v7 = vld [vmem:[%s3844_s1 + $0x8] sm:$0xff]   ;;  %vm62_vm1 = vcmask 261120   ;;  %s2998_s17 = smov 32  }
  0x11   :  { %v3097_v8 = vld [vmem:[%s3844_s1] sm:$0xff]   ;;  %v3122_v26 = vld [vmem:[%s3845_s2 + $0x38] sm:$0xff]   ;;  %v3128_v27 = vld [vmem:[%s3845_s2 + $0x30] sm:$0xff]   ;;  %s2999_s22 = smov 64   ;;  %s3000_s27 = smov 112   ;;  %vm300_vm2 = vcmask 130048  }
  0x12   :  { %2360 = vmatpush3.bf16.msra.mxu0 %v3075_v5  ;;  %v61_v9 = vld [vmem:[%s3843_s0] sm:$0xf]  ;;  %v3162_v38 = vld [vmem:[%s3845_s2 + $0x48] sm:$0xff]   ;;  %v3195_v50 = vld [vmem:[%s3845_s2 + $0x18] sm:$0xff]   ;;  %s3001_s16 = smov 96   ;;  %vm316_vm3 = vcmask 523264  }
  0x13   :  { %2361 = vmatprep.subr.bf16.mxu0 %v2996_v1  ;;  %v3111_v10 = vld [vmem:[%s3846_s3] sm:$0xff]  ;;  %2380 = vmatpush3.bf16.msra.mxu1 %v3162_v38  ;;  %v3181_v46 = vld [vmem:[%s3845_s2 + $0x28] sm:$0xff]   ;;  %v3202_v51 = vld [vmem:[%s3845_s2 + $0x10] sm:$0xff]   ;;  %vm355_vm4 = vcmask 785408   ;;  %vm638_vm5 = vcmask 523520   ;;  %vm878_vm6 = vcmask 785920  }
  0x14   :  { %v3168_v39 = vld [vmem:[%s3845_s2 + $0x40] sm:$0xff]   ;;  %2381 = vmatprep.subr.bf16.mxu1 %v2996_v1  ;;  %v3212_v53 = vld [vmem:[%s3845_s2 + $0x8] sm:$0xff]   ;;  %vm1118_vm7 = vcmask 1048320  }
  0x15   :  { %v3189_v49 = vld [vmem:[%s3845_s2 + $0x20] sm:$0xff]  }
  0x16   :  { %2362 = vmatpush3.bf16.msra.mxu0 %v3083_v6  ;;  %v2794_v52 = vld [vmem:[%s3843_s0] ss:$0 sps:$4 sm:$0xff]  }
  0x17   :  { %2363 = vmatprep.subr.bf16.mxu0 %v2996_v1  ;;  %2382 = vmatpush3.bf16.msra.mxu1 %v3168_v39  ;;  %v3220_v54 = vld [vmem:[%s3845_s2] sm:$0xff]  }
  0x18   :  { %2387 = vmatprep.subr.bf16.mxu1 %v2996_v1 }
  0x1a   :  { %2364 = vmatpush3.bf16.msra.mxu0 %v3090_v7 }
  0x1b   :  { %2365 = vmatprep.subr.bf16.mxu0 %v2996_v1 }
  0x1e   :  { %2366 = vmatpush3.bf16.msra.mxu0 %v3097_v8 }
  0x1f   :  { %2371 = vmatprep.subr.bf16.mxu0 %v2996_v1 }
  0x21   :  { %2368 = vmatmul.mubr.msk.bf16.vlgmr.msra.gmra.mxu0 %vm62_vm1, %v61_v9 }
  0x22   :  { %2375 = vmatprep.mubr.msk.bf16.mxu0 %vm2997_vm0, %v2996_v1  ;;  %2372 = vmatpush3.bf16.msra.mxu0 %v3122_v26 }
  0x23   :  { %2373 = vmatprep.subr.bf16.mxu0 %v2996_v1 }
  0x26   :  { %2374 = vmatpush3.bf16.msra.mxu0 %v3128_v27 }
  0x27   :  { %2403 = vmatprep.subr.bf16.mxu0 %v2996_v1 }
  0xe1   :  { %v149_v11 = vpop.f32.mrf.mxu0 }
  0xe2   :  { %v150_v12 = vadd.f32 %v149_v11, %v3111_v10 }
  0xe3   :  { %v2369_v13 = vpop.f32.mrf.mxu0 }
  0xe4   :  { %2800 = vtanh.f32 %v150_v12  ;;  %v2127_v17 = vmul.f32 -1.442695, %v150_v12 }
  0xe5   :  { %v152_v14 = vpop.f32.mrf.mxu0 }
  0xe6   :  { %2802 = vpow2.f32 %v2127_v17  ;;  %v3258_v17 = vld [vmem:[%s3846_s3 + $0x8] sm:$0xff] }
  0xe7   :  { %v2370_v15 = vpop.f32.mrf.mxu0 }
  0xf1   :  { %v2801_v16 = vpop.eup %2800 }
  0xf2   :  { %164 = vrot.lane.b32.xlu0 %v2801_v16, %s2998_s17 }
  0xf3   :  { %v2803_v18 = vpop.eup %2802 }
  0xf4   :  { %v158_v19 = vadd.f32 1.0, %v2803_v18 }
  0xf6   :  { %2804 = vrcp.f32 %v158_v19 }
 0x103   :  { %v2805_v20 = vpop.eup %2804 }
 0x104   :  { %v162_v23 = vmul.f32 0.0, %v2805_v20 }
 0x164   :  { %v165_v21 = vpop.permute.xlu0 %164 }
 0x165   :  { %v167_v22 = vmul.f32 %v2805_v20, %v165_v21 }
 0x167   :  { %169 = vrot.lane.b32.xlu0 %v167_v22, %s2998_s17 }
 0x1d9   :  { %v170_v24 = vpop.permute.xlu0 %169 }
 0x1da   :  { %v3116_v25 = vadd.f32 %v170_v24, %v162_v23 }
 0x1dc   :  { %2806 = vtanh.f32 %v3116_v25 }
 0x1e9   :  { %v2807_v28 = vpop.eup %2806 }
 0x1ea   :  { %175 = vrot.lane.b32.xlu1 %v2807_v28, %s2998_s17 }
 0x25c   :  { %v176_v29 = vpop.permute.xlu1 %175 }
 0x25d   :  { %v3134_v30 = vmul.f32 %v2805_v20, %v176_v29 }
 0x25f   :  { %v179_v31 = vpack.c.bf16 %v3134_v30, %v3134_v30 }
 0x261   :  { %181 = vrot.lane.b32.xlu1 %v179_v31, %s2999_s22 }
 0x2d3   :  { %v182_v32 = vpop.permute.xlu1 %181 }
 0x2d4   :  { %2376 = vmatmul.mubr.msk.bf16.vlgmr.msra.gmra.mxu0 %vm62_vm1, %v182_v32 }
 0x2d5   :  { %2404 = vmatpush3.bf16.msra.mxu0 %v3043_v0  ;;  %2419 = vmatprep.mubr.msk.bf16.mxu0 %vm2997_vm0, %v2996_v1 }
 0x2d6   :  { %2405 = vmatprep.subr.bf16.mxu0 %v2996_v1 }
 0x2d9   :  { %2406 = vmatpush3.bf16.msra.mxu0 %v3051_v2 }
 0x2da   :  { %2407 = vmatprep.subr.bf16.mxu0 %v2996_v1 }
 0x2dd   :  { %2408 = vmatpush3.bf16.msra.mxu0 %v3062_v3 }
 0x2de   :  { %2409 = vmatprep.subr.bf16.mxu0 %v2996_v1 }
 0x2e1   :  { %2410 = vmatpush3.bf16.msra.mxu0 %v3068_v4 }
 0x2e2   :  { %2411 = vmatprep.subr.bf16.mxu0 %v2996_v1 }
 0x2e5   :  { %2412 = vmatpush3.bf16.msra.mxu0 %v3075_v5 }
 0x2e6   :  { %2413 = vmatprep.subr.bf16.mxu0 %v2996_v1 }
 0x2e9   :  { %2414 = vmatpush3.bf16.msra.mxu0 %v3083_v6 }
 0x2ea   :  { %2415 = vmatprep.subr.bf16.mxu0 %v2996_v1 }
 0x2ed   :  { %2416 = vmatpush3.bf16.msra.mxu0 %v3090_v7 }
 0x2ee   :  { %2417 = vmatprep.subr.bf16.mxu0 %v2996_v1 }
 0x2f1   :  { %2418 = vmatpush3.bf16.msra.mxu0 %v3097_v8 }
 0x2f2   :  { %2455 = vmatprep.subr.bf16.mxu0 %v2996_v1 }
 0x394   :  { %v232_v33 = vpop.f32.mrf.mxu0 }
 0x395   :  { %v238_v34 = vsel %vm62_vm1, %v232_v33, -inf }
 0x396   :  { %239 = vmax.xlane.f32.xlu0 %v238_v34  ;;  %v2377_v35 = vpop.f32.mrf.mxu0 }
 0x398   :  { %v235_v36 = vpop.f32.mrf.mxu0 }
 0x39a   :  { %v2378_v37 = vpop.f32.mrf.mxu0 }
 0x41f   :  { %v240_v40 = vpop.xlane.xlu0 %239 }
 0x420   :  { %v241_v41 = vsub.f32 %v232_v33, %v240_v40 }
 0x422   :  { %v242_v42 = vmul.f32 1.442695, %v241_v41 }
 0x424   :  { %2808 = vpow2.f32 %v242_v42 }
 0x431   :  { %v2809_v43 = vpop.eup %2808 }
 0x432   :  { %307 = vrot.lane.b32.xlu1 %v2809_v43, %s3000_s27  ;;  %v244_v44 = vpack.c.bf16 %v2809_v43, %v2809_v43  ;;  %v301_v45 = vsel %vm300_vm2, %v2809_v43, 0.0 }
 0x434   :  { %2384 = vmatmul.mubr.msk.bf16.vlgmr.msra.gmra.mxu1 %vm62_vm1, %v244_v44 }
 0x435   :  { %2399 = vmatprep.mubr.msk.bf16.mxu1 %vm2997_vm0, %v2996_v1  ;;  %2388 = vmatpush3.bf16.msra.mxu1 %v3181_v46 }
 0x436   :  { %2389 = vmatprep.subr.bf16.mxu1 %v2996_v1 }
 0x439   :  { %2390 = vmatpush3.bf16.msra.mxu1 %v3189_v49 }
 0x43a   :  { %2391 = vmatprep.subr.bf16.mxu1 %v2996_v1 }
 0x43d   :  { %2392 = vmatpush3.bf16.msra.mxu1 %v3195_v50 }
 0x43e   :  { %2393 = vmatprep.subr.bf16.mxu1 %v2996_v1 }
 0x441   :  { %2394 = vmatpush3.bf16.msra.mxu1 %v3202_v51 }
 0x442   :  { %2395 = vmatprep.subr.bf16.mxu1 %v2996_v1 }
 0x445   :  { %2396 = vmatpush3.bf16.msra.mxu1 %v3212_v53 }
 0x446   :  { %2397 = vmatprep.subr.bf16.mxu1 %v2996_v1 }
 0x449   :  { %2398 = vmatpush3.bf16.msra.mxu1 %v3220_v54 }
 0x44a   :  { %2423 = vmatprep.subr.bf16.mxu1 %v2996_v1 }
 0x456   :  { %302 = vadd.xlane.f32.xlu1 %v301_v45 }
 0x4a4   :  { %v308_v47 = vpop.permute.xlu1 %307 }
 0x4a5   :  { %v310_v48 = vsel %vm300_vm2, %v308_v47, 0.0 }
 0x4a6   :  { %311 = vadd.xlane.f32.xlu0 %v310_v48 }
 0x4bc   :  { %404 = vrot.lane.b32.xlu0 %v2794_v52, %s3001_s16 }
 0x4df   :  { %v303_v59 = vpop.xlane.xlu1 %302 }
 0x4e0   :  { %2810 = vrcp.f32 %v303_v59 }
 0x4ed   :  { %v2811_v61 = vpop.eup %2810 }
 0x4f4   :  { %v294_v55 = vpop.f32.mrf.mxu1 }
 0x4f5   :  { %v305_v63 = vmul.f32 %v2811_v61, %v294_v55 }
 0x4f6   :  { %v2385_v56 = vpop.f32.mrf.mxu1 }
 0x4f8   :  { %v297_v57 = vpop.f32.mrf.mxu1 }
 0x4fa   :  { %v2386_v58 = vpop.f32.mrf.mxu1 }
 0x52f   :  { %v312_v60 = vpop.xlane.xlu0 %311 }
 0x530   :  { %2812 = vrcp.f32 %v312_v60 }
 0x533   :  { %v405_v14 = vpop.permute.xlu0 %404 }
 0x53d   :  { %v2813_v62 = vpop.eup %2812 }
 0x53e   :  { %v314_v9 = vmul.f32 %v2813_v62, %v294_v55 }
 0x540   :  { %v315_v11 = vsel %vm62_vm1, %v305_v63, %v314_v9 }
 0x541   :  { %v317_v12 = vsel %vm316_vm3, %v315_v11, %v3134_v30 }
 0x542   :  { %v318_v13 = vpack.c.bf16 %v317_v12, %v317_v12  ;;  %v2795_v12 = vld [vmem:[%s3843_s0] ss:$0 sps:$4 sm:$0xff]  }
 0x544   :  { %407 = vrot.lane.b32.xlu1 %v318_v13, %s2998_s17  ;;  %2400 = vmatmul.mubr.msk.bf16.vlgmr.msra.gmra.mxu1 %vm355_vm4, %v318_v13 }
 0x545   :  { %2424 = vmatpush3.bf16.msra.mxu1 %v3122_v26  ;;  %2427 = vmatprep.mubr.msk.bf16.mxu1 %vm2997_vm0, %v2996_v1 }
 0x546   :  { %2425 = vmatprep.subr.bf16.mxu1 %v2996_v1 }
 0x549   :  { %2426 = vmatpush3.bf16.msra.mxu1 %v3128_v27 }
 0x54a   :  { %2431 = vmatprep.subr.bf16.mxu1 %v2996_v1 }
 0x5b6   :  { %v408_v15 = vpop.permute.xlu1 %407 }
 0x5b7   :  { %v411_v16 = vsel %vm62_vm1, %v405_v14, %v408_v15 }
 0x5b8   :  { %2420 = vmatmul.mubr.bf16.vlgmr.msra.gmra.mxu0 %v411_v16 }
 0x5b9   :  { %2456 = vmatpush3.bf16.msra.mxu0 %v3043_v0  ;;  %2471 = vmatprep.mubr.msk.bf16.mxu0 %vm2997_vm0, %v2996_v1 }
 0x5ba   :  { %2457 = vmatprep.subr.bf16.mxu0 %v2996_v1 }
 0x5bd   :  { %2458 = vmatpush3.bf16.msra.mxu0 %v3051_v2 }
 0x5be   :  { %2459 = vmatprep.subr.bf16.mxu0 %v2996_v1 }
 0x5c1   :  { %2460 = vmatpush3.bf16.msra.mxu0 %v3062_v3 }
 0x5c2   :  { %2461 = vmatprep.subr.bf16.mxu0 %v2996_v1 }
 0x5c5   :  { %2462 = vmatpush3.bf16.msra.mxu0 %v3068_v4 }
 0x5c6   :  { %2463 = vmatprep.subr.bf16.mxu0 %v2996_v1 }
 0x5c9   :  { %2464 = vmatpush3.bf16.msra.mxu0 %v3075_v5 }
 0x5ca   :  { %2465 = vmatprep.subr.bf16.mxu0 %v2996_v1 }
 0x5cd   :  { %2466 = vmatpush3.bf16.msra.mxu0 %v3083_v6 }
 0x5ce   :  { %2467 = vmatprep.subr.bf16.mxu0 %v2996_v1 }
 0x5d1   :  { %2468 = vmatpush3.bf16.msra.mxu0 %v3090_v7 }
 0x5d2   :  { %2469 = vmatprep.subr.bf16.mxu0 %v2996_v1 }
 0x5d5   :  { %2470 = vmatpush3.bf16.msra.mxu0 %v3097_v8 }
 0x5d6   :  { %2491 = vmatprep.subr.bf16.mxu0 %v2996_v1 }
 0x604   :  { %v393_v18 = vpop.f32.mrf.mxu1 }
 0x605   :  { %v394_v19 = vadd.f32 %v393_v18, %v3258_v17 }
 0x606   :  { %v2401_v20 = vpop.f32.mrf.mxu1 }
 0x607   :  { %399 = vst.msk [vmem:[#allocation2] sm:$0xff] %vm62_vm1, %v394_v19 }
 0x608   :  { %v396_v21 = vpop.f32.mrf.mxu1 }
 0x60a   :  { %v2402_v22 = vpop.f32.mrf.mxu1 }
 0x678   :  { %v447_v23 = vpop.f32.mrf.mxu0 }
 0x679   :  { %v448_v24 = vadd.f32 %v447_v23, %v3111_v10 }
 0x67a   :  { %v2421_v28 = vpop.f32.mrf.mxu0 }
 0x67b   :  { %2814 = vtanh.f32 %v448_v24  ;;  %v2142_v32 = vmul.f32 -1.442695, %v448_v24 }
 0x67c   :  { %v450_v29 = vpop.f32.mrf.mxu0 }
 0x67d   :  { %2816 = vpow2.f32 %v2142_v32 }
 0x67e   :  { %v2422_v30 = vpop.f32.mrf.mxu0 }
 0x688   :  { %v2815_v31 = vpop.eup %2814 }
 0x689   :  { %462 = vrot.lane.b32.xlu0 %v2815_v31, %s2998_s17 }
 0x68a   :  { %v2817_v33 = vpop.eup %2816 }
 0x68b   :  { %v456_v34 = vadd.f32 1.0, %v2817_v33 }
 0x68d   :  { %2818 = vrcp.f32 %v456_v34 }
 0x69a   :  { %v2819_v35 = vpop.eup %2818 }
 0x69b   :  { %v460_v40 = vmul.f32 %v2819_v35, %v3116_v25 }
 0x6fb   :  { %v463_v36 = vpop.permute.xlu0 %462 }
 0x6fc   :  { %v465_v37 = vmul.f32 %v2819_v35, %v463_v36 }
 0x6fe   :  { %467 = vrot.lane.b32.xlu1 %v465_v37, %s2998_s17 }
 0x770   :  { %v468_v41 = vpop.permute.xlu1 %467 }
 0x771   :  { %v3266_v42 = vadd.f32 %v468_v41, %v460_v40 }
 0x773   :  { %2820 = vtanh.f32 %v3266_v42 }
 0x780   :  { %v2821_v43 = vpop.eup %2820 }
 0x781   :  { %473 = vrot.lane.b32.xlu0 %v2821_v43, %s2998_s17 }
 0x7f3   :  { %v474_v44 = vpop.permute.xlu0 %473 }
 0x7f4   :  { %v476_v45 = vmul.f32 %v2819_v35, %v474_v44 }
 0x7f6   :  { %v477_v47 = vpack.c.bf16 %v476_v45, %v476_v45 }
 0x7f8   :  { %479 = vrot.lane.b32.xlu1 %v477_v47, %s2999_s22 }
 0x86a   :  { %v480_v48 = vpop.permute.xlu1 %479 }
 0x86b   :  { %2428 = vmatmul.mubr.msk.bf16.vlgmr.msra.gmra.mxu1 %vm62_vm1, %v480_v48 }
 0x86c   :  { %2432 = vmatpush3.bf16.msra.mxu1 %v3162_v38  ;;  %2435 = vmatprep.mubr.msk.bf16.mxu1 %vm2997_vm0, %v2996_v1 }
 0x86d   :  { %2433 = vmatprep.subr.bf16.mxu1 %v2996_v1 }
 0x870   :  { %2434 = vmatpush3.bf16.msra.mxu1 %v3168_v39 }
 0x871   :  { %2439 = vmatprep.subr.bf16.mxu1 %v2996_v1 }
 0x92b   :  { %v518_v25 = vpop.f32.mrf.mxu1 }
 0x92c   :  { %v524_v52 = vsel %vm62_vm1, %v518_v25, -inf }
 0x92d   :  { %525 = vmax.xlane.f32.xlu0 %v524_v52  ;;  %v2429_v55 = vpop.f32.mrf.mxu1 }
 0x92f   :  { %v521_v56 = vpop.f32.mrf.mxu1 }
 0x931   :  { %v2430_v57 = vpop.f32.mrf.mxu1 }
 0x9b6   :  { %v526_v58 = vpop.xlane.xlu0 %525 }
 0x9b7   :  { %v527_v59 = vsub.f32 %v518_v25, %v526_v58 }
 0x9b9   :  { %v528_v60 = vmul.f32 1.442695, %v527_v59 }
 0x9bb   :  { %2822 = vpow2.f32 %v528_v60 }
 0x9c8   :  { %v2823_v61 = vpop.eup %2822 }
 0x9c9   :  { %580 = vrot.lane.b32.xlu1 %v2823_v61, %s3000_s27  ;;  %v530_v62 = vpack.c.bf16 %v2823_v61, %v2823_v61  ;;  %v574_v63 = vsel %vm300_vm2, %v2823_v61, 0.0 }
 0x9cb   :  { %2436 = vmatmul.mubr.msk.bf16.vlgmr.msra.gmra.mxu1 %vm62_vm1, %v530_v62 }
 0x9cc   :  { %2440 = vmatpush3.bf16.msra.mxu1 %v3181_v46  ;;  %2451 = vmatprep.mubr.msk.bf16.mxu1 %vm2997_vm0, %v2996_v1 }
 0x9cd   :  { %2441 = vmatprep.subr.bf16.mxu1 %v2996_v1 }
 0x9d0   :  { %2442 = vmatpush3.bf16.msra.mxu1 %v3189_v49 }
 0x9d1   :  { %2443 = vmatprep.subr.bf16.mxu1 %v2996_v1 }
 0x9d4   :  { %2444 = vmatpush3.bf16.msra.mxu1 %v3195_v50 }
 0x9d5   :  { %2445 = vmatprep.subr.bf16.mxu1 %v2996_v1 }
 0x9d8   :  { %2446 = vmatpush3.bf16.msra.mxu1 %v3202_v51 }
 0x9d9   :  { %2447 = vmatprep.subr.bf16.mxu1 %v2996_v1 }
 0x9dc   :  { %2448 = vmatpush3.bf16.msra.mxu1 %v3212_v53 }
 0x9dd   :  { %2449 = vmatprep.subr.bf16.mxu1 %v2996_v1 }
 0x9e0   :  { %2450 = vmatpush3.bf16.msra.mxu1 %v3220_v54 }
 0x9e1   :  { %2475 = vmatprep.subr.bf16.mxu1 %v2996_v1 }
 0x9ed   :  { %575 = vadd.xlane.f32.xlu1 %v574_v63 }
 0xa3b   :  { %v581_v9 = vpop.permute.xlu1 %580 }
 0xa3c   :  { %v583_v11 = vsel %vm300_vm2, %v581_v9, 0.0 }
 0xa3d   :  { %584 = vadd.xlane.f32.xlu0 %v583_v11 }
 0xa53   :  { %644 = vrot.lane.b32.xlu0 %v2795_v12, %s2999_s22 }
 0xa76   :  { %v576_v18 = vpop.xlane.xlu1 %575 }
 0xa77   :  { %2824 = vrcp.f32 %v576_v18 }
 0xa84   :  { %v2825_v20 = vpop.eup %2824 }
 0xa8b   :  { %v568_v13 = vpop.f32.mrf.mxu1 }
 0xa8c   :  { %v578_v22 = vmul.f32 %v2825_v20, %v568_v13 }
 0xa8d   :  { %v2437_v14 = vpop.f32.mrf.mxu1 }
 0xa8f   :  { %v571_v15 = vpop.f32.mrf.mxu1 }
 0xa91   :  { %v2438_v16 = vpop.f32.mrf.mxu1 }
 0xac6   :  { %v585_v19 = vpop.xlane.xlu0 %584 }
 0xac7   :  { %2826 = vrcp.f32 %v585_v19 }
 0xaca   :  { %v645_v30 = vpop.permute.xlu0 %644 }
 0xad4   :  { %v2827_v21 = vpop.eup %2826 }
 0xad5   :  { %v587_v23 = vmul.f32 %v2827_v21, %v568_v13 }
 0xad7   :  { %v588_v24 = vsel %vm62_vm1, %v578_v22, %v587_v23 }
 0xad8   :  { %v589_v28 = vsel %vm316_vm3, %v588_v24, %v476_v45  ;;  %v2796_v24 = vld [vmem:[%s3843_s0] ss:$0 sps:$4 sm:$0xff]  }
 0xad9   :  { %v590_v29 = vpack.c.bf16 %v589_v28, %v589_v28 }
 0xadb   :  { %647 = vrot.lane.b32.xlu1 %v590_v29, %s2998_s17  ;;  %2452 = vmatmul.mubr.msk.bf16.vlgmr.msra.gmra.mxu1 %vm355_vm4, %v590_v29 }
 0xadc   :  { %2476 = vmatpush3.bf16.msra.mxu1 %v3122_v26  ;;  %2479 = vmatprep.mubr.msk.bf16.mxu1 %vm2997_vm0, %v2996_v1 }
 0xadd   :  { %2477 = vmatprep.subr.bf16.mxu1 %v2996_v1 }
 0xae0   :  { %2478 = vmatpush3.bf16.msra.mxu1 %v3128_v27 }
 0xae1   :  { %2483 = vmatprep.subr.bf16.mxu1 %v2996_v1 }
 0xb4d   :  { %v648_v31 = vpop.permute.xlu1 %647 }
 0xb4e   :  { %v651_v32 = vsel %vm62_vm1, %v645_v30, %v648_v31 }
 0xb4f   :  { %2472 = vmatmul.mubr.bf16.vlgmr.msra.gmra.mxu0 %v651_v32 }
 0xb50   :  { %2492 = vmatpush3.bf16.msra.mxu0 %v3181_v46  ;;  %2503 = vmatprep.mubr.msk.bf16.mxu0 %vm2997_vm0, %v2996_v1 }
 0xb51   :  { %2493 = vmatprep.subr.bf16.mxu0 %v2996_v1 }
 0xb54   :  { %2494 = vmatpush3.bf16.msra.mxu0 %v3189_v49 }
 0xb55   :  { %2495 = vmatprep.subr.bf16.mxu0 %v2996_v1 }
 0xb58   :  { %2496 = vmatpush3.bf16.msra.mxu0 %v3195_v50 }
 0xb59   :  { %2497 = vmatprep.subr.bf16.mxu0 %v2996_v1 }
 0xb5c   :  { %2498 = vmatpush3.bf16.msra.mxu0 %v3202_v51 }
 0xb5d   :  { %2499 = vmatprep.subr.bf16.mxu0 %v2996_v1 }
 0xb60   :  { %2500 = vmatpush3.bf16.msra.mxu0 %v3212_v53 }
 0xb61   :  { %2501 = vmatprep.subr.bf16.mxu0 %v2996_v1 }
 0xb64   :  { %2502 = vmatpush3.bf16.msra.mxu0 %v3220_v54 }
 0xb65   :  { %2527 = vmatprep.subr.bf16.mxu0 %v2996_v1 }
 0xb9b   :  { %v3326_v33 = vpop.f32.mrf.mxu1 }
 0xb9d   :  { %v2453_v34 = vpop.f32.mrf.mxu1 }
 0xb9f   :  { %v631_v35 = vpop.f32.mrf.mxu1 }
 0xba1   :  { %v2454_v36 = vpop.f32.mrf.mxu1 }
 0xc0f   :  { %v687_v37 = vpop.f32.mrf.mxu0 }
 0xc10   :  { %v688_v40 = vadd.f32 %v687_v37, %v3111_v10 }
 0xc11   :  { %v2473_v41 = vpop.f32.mrf.mxu0 }
 0xc12   :  { %2828 = vtanh.f32 %v688_v40  ;;  %v2147_v47 = vmul.f32 -1.442695, %v688_v40 }
 0xc13   :  { %v690_v43 = vpop.f32.mrf.mxu0 }
 0xc14   :  { %2830 = vpow2.f32 %v2147_v47 }
 0xc15   :  { %v2474_v44 = vpop.f32.mrf.mxu0 }
 0xc1f   :  { %v2829_v45 = vpop.eup %2828 }
 0xc20   :  { %702 = vrot.lane.b32.xlu0 %v2829_v45, %s2998_s17 }
 0xc21   :  { %v2831_v48 = vpop.eup %2830 }
 0xc22   :  { %v696_v25 = vadd.f32 1.0, %v2831_v48 }
 0xc24   :  { %2832 = vrcp.f32 %v696_v25 }
 0xc31   :  { %v2833_v52 = vpop.eup %2832 }
 0xc32   :  { %v700_v57 = vmul.f32 %v2833_v52, %v3266_v42 }
 0xc92   :  { %v703_v55 = vpop.permute.xlu0 %702 }
 0xc93   :  { %v705_v56 = vmul.f32 %v2833_v52, %v703_v55 }
 0xc95   :  { %707 = vrot.lane.b32.xlu1 %v705_v56, %s2998_s17 }
 0xd07   :  { %v708_v58 = vpop.permute.xlu1 %707 }
 0xd08   :  { %v3332_v59 = vadd.f32 %v708_v58, %v700_v57 }
 0xd0a   :  { %2834 = vtanh.f32 %v3332_v59 }
 0xd17   :  { %v2835_v60 = vpop.eup %2834 }
 0xd18   :  { %713 = vrot.lane.b32.xlu0 %v2835_v60, %s2998_s17 }
 0xd8a   :  { %v714_v61 = vpop.permute.xlu0 %713 }
 0xd8b   :  { %v716_v62 = vmul.f32 %v2833_v52, %v714_v61 }
 0xd8d   :  { %v717_v63 = vpack.c.bf16 %v716_v62, %v716_v62 }
 0xd8f   :  { %719 = vrot.lane.b32.xlu1 %v717_v63, %s2999_s22 }
 0xe01   :  { %v720_v9 = vpop.permute.xlu1 %719 }
 0xe02   :  { %2480 = vmatmul.mubr.msk.bf16.vlgmr.msra.gmra.mxu1 %vm62_vm1, %v720_v9 }
 0xe03   :  { %2484 = vmatpush3.bf16.msra.mxu1 %v3162_v38  ;;  %2487 = vmatprep.mubr.msk.bf16.mxu1 %vm2997_vm0, %v2996_v1 }
 0xe04   :  { %2485 = vmatprep.subr.bf16.mxu1 %v2996_v1 }
 0xe07   :  { %2486 = vmatpush3.bf16.msra.mxu1 %v3168_v39 }
 0xe08   :  { %2507 = vmatprep.subr.bf16.mxu1 %v2996_v1 }
 0xec2   :  { %v758_v42 = vpop.f32.mrf.mxu1 }
 0xec3   :  { %v764_v11 = vsel %vm62_vm1, %v758_v42, -inf }
 0xec4   :  { %765 = vmax.xlane.f32.xlu0 %v764_v11  ;;  %v2481_v12 = vpop.f32.mrf.mxu1 }
 0xec6   :  { %v761_v13 = vpop.f32.mrf.mxu1 }
 0xec8   :  { %v2482_v14 = vpop.f32.mrf.mxu1 }
 0xf4d   :  { %v766_v15 = vpop.xlane.xlu0 %765 }
 0xf4e   :  { %v767_v16 = vsub.f32 %v758_v42, %v766_v15 }
 0xf50   :  { %v768_v18 = vmul.f32 1.442695, %v767_v16 }
 0xf52   :  { %2836 = vpow2.f32 %v768_v18 }
 0xf5f   :  { %v2837_v19 = vpop.eup %2836 }
 0xf60   :  { %820 = vrot.lane.b32.xlu1 %v2837_v19, %s3000_s27  ;;  %v770_v20 = vpack.c.bf16 %v2837_v19, %v2837_v19  ;;  %v814_v21 = vsel %vm300_vm2, %v2837_v19, 0.0 }
 0xf62   :  { %2488 = vmatmul.mubr.msk.bf16.vlgmr.msra.gmra.mxu1 %vm62_vm1, %v770_v20 }
 0xf63   :  { %2508 = vmatpush3.bf16.msra.mxu1 %v3043_v0  ;;  %2523 = vmatprep.mubr.msk.bf16.mxu1 %vm2997_vm0, %v2996_v1 }
 0xf64   :  { %2509 = vmatprep.subr.bf16.mxu1 %v2996_v1 }
 0xf67   :  { %2510 = vmatpush3.bf16.msra.mxu1 %v3051_v2 }
 0xf68   :  { %2511 = vmatprep.subr.bf16.mxu1 %v2996_v1 }
 0xf6b   :  { %2512 = vmatpush3.bf16.msra.mxu1 %v3062_v3 }
 0xf6c   :  { %2513 = vmatprep.subr.bf16.mxu1 %v2996_v1 }
 0xf6f   :  { %2514 = vmatpush3.bf16.msra.mxu1 %v3068_v4 }
 0xf70   :  { %2515 = vmatprep.subr.bf16.mxu1 %v2996_v1 }
 0xf73   :  { %2516 = vmatpush3.bf16.msra.mxu1 %v3075_v5 }
 0xf74   :  { %2517 = vmatprep.subr.bf16.mxu1 %v2996_v1 }
 0xf77   :  { %2518 = vmatpush3.bf16.msra.mxu1 %v3083_v6 }
 0xf78   :  { %2519 = vmatprep.subr.bf16.mxu1 %v2996_v1 }
 0xf7b   :  { %2520 = vmatpush3.bf16.msra.mxu1 %v3090_v7 }
 0xf7c   :  { %2521 = vmatprep.subr.bf16.mxu1 %v2996_v1 }
 0xf7f   :  { %2522 = vmatpush3.bf16.msra.mxu1 %v3097_v8 }
 0xf80   :  { %2543 = vmatprep.subr.bf16.mxu1 %v2996_v1 }
 0xf84   :  { %815 = vadd.xlane.f32.xlu1 %v814_v21 }
 0xfd2   :  { %v821_v22 = vpop.permute.xlu1 %820 }
 0xfd3   :  { %v823_v23 = vsel %vm300_vm2, %v821_v22, 0.0 }
 0xfd4   :  { %824 = vadd.xlane.f32.xlu0 %v823_v23 }
 0xfea   :  { %884 = vrot.lane.b32.xlu0 %v2796_v24, %s2998_s17 }
0x100d   :  { %v816_v32 = vpop.xlane.xlu1 %815 }
0x100e   :  { %2838 = vrcp.f32 %v816_v32 }
0x101b   :  { %v2839_v35 = vpop.eup %2838 }
0x1022   :  { %v808_v28 = vpop.f32.mrf.mxu1 }
0x1023   :  { %v818_v37 = vmul.f32 %v2839_v35, %v808_v28 }
0x1024   :  { %v2489_v29 = vpop.f32.mrf.mxu1 }
0x1026   :  { %v811_v30 = vpop.f32.mrf.mxu1 }
0x1028   :  { %v2490_v31 = vpop.f32.mrf.mxu1 }
0x105d   :  { %v825_v34 = vpop.xlane.xlu0 %824 }
0x105e   :  { %2840 = vrcp.f32 %v825_v34 }
0x1061   :  { %v885_v45 = vpop.permute.xlu0 %884 }
0x106b   :  { %v2841_v36 = vpop.eup %2840 }
0x106c   :  { %v827_v40 = vmul.f32 %v2841_v36, %v808_v28 }
0x106e   :  { %v828_v41 = vsel %vm62_vm1, %v818_v37, %v827_v40 }
0x106f   :  { %v829_v43 = vsel %vm316_vm3, %v828_v41, %v716_v62 }
0x1070   :  { %v830_v44 = vpack.c.bf16 %v829_v43, %v829_v43 }
0x1072   :  { %887 = vrot.lane.b32.xlu1 %v830_v44, %s2998_s17  ;;  %2504 = vmatmul.mubr.msk.bf16.vlgmr.msra.gmra.mxu0 %vm355_vm4, %v830_v44 }
0x1073   :  { %2528 = vmatpush3.bf16.msra.mxu0 %v3122_v26  ;;  %2531 = vmatprep.mubr.msk.bf16.mxu0 %vm2997_vm0, %v2996_v1 }
0x1074   :  { %2529 = vmatprep.subr.bf16.mxu0 %v2996_v1 }
0x1077   :  { %2530 = vmatpush3.bf16.msra.mxu0 %v3128_v27 }
0x1078   :  { %2535 = vmatprep.subr.bf16.mxu0 %v2996_v1 }
0x10e4   :  { %v888_v47 = vpop.permute.xlu1 %887 }
0x10e5   :  { %v891_v48 = vsel %vm62_vm1, %v885_v45, %v888_v47 }
0x10e6   :  { %2524 = vmatmul.mubr.bf16.vlgmr.msra.gmra.mxu1 %v891_v48 }
0x10e7   :  { %2544 = vmatpush3.bf16.msra.mxu1 %v3181_v46  ;;  %2555 = vmatprep.mubr.msk.bf16.mxu1 %vm2997_vm0, %v2996_v1 }
0x10e8   :  { %2545 = vmatprep.subr.bf16.mxu1 %v2996_v1 }
0x10eb   :  { %2546 = vmatpush3.bf16.msra.mxu1 %v3189_v49 }
0x10ec   :  { %2547 = vmatprep.subr.bf16.mxu1 %v2996_v1 }
0x10ef   :  { %2548 = vmatpush3.bf16.msra.mxu1 %v3195_v50 }
0x10f0   :  { %2549 = vmatprep.subr.bf16.mxu1 %v2996_v1 }
0x10f3   :  { %2550 = vmatpush3.bf16.msra.mxu1 %v3202_v51 }
0x10f4   :  { %2551 = vmatprep.subr.bf16.mxu1 %v2996_v1 }
0x10f7   :  { %2552 = vmatpush3.bf16.msra.mxu1 %v3212_v53 }
0x10f8   :  { %2553 = vmatprep.subr.bf16.mxu1 %v2996_v1 }
0x10fb   :  { %2554 = vmatpush3.bf16.msra.mxu1 %v3220_v54 }
0x10fc   :  { %2579 = vmatprep.subr.bf16.mxu1 %v2996_v1 }
0x1132   :  { %v3396_v25 = vpop.f32.mrf.mxu0 }
0x1134   :  { %v2505_v52 = vpop.f32.mrf.mxu0 }
0x1135   :  { %v1120_v52 = vld [vmem:[%s3843_s0 + $0x4] sm:$0xf] }
0x1136   :  { %v871_v55 = vpop.f32.mrf.mxu0 }
0x1138   :  { %v2506_v56 = vpop.f32.mrf.mxu0 }
0x11a6   :  { %v927_v57 = vpop.f32.mrf.mxu1 }
0x11a7   :  { %v928_v58 = vadd.f32 %v927_v57, %v3111_v10 }
0x11a8   :  { %v2525_v60 = vpop.f32.mrf.mxu1 }
0x11a9   :  { %2842 = vtanh.f32 %v928_v58  ;;  %v2152_v9 = vmul.f32 -1.442695, %v928_v58 }
0x11aa   :  { %v930_v61 = vpop.f32.mrf.mxu1 }
0x11ab   :  { %2844 = vpow2.f32 %v2152_v9 }
0x11ac   :  { %v2526_v62 = vpop.f32.mrf.mxu1 }
0x11b6   :  { %v2843_v63 = vpop.eup %2842 }
0x11b7   :  { %942 = vrot.lane.b32.xlu0 %v2843_v63, %s2998_s17 }
0x11b8   :  { %v2845_v42 = vpop.eup %2844 }
0x11b9   :  { %v936_v11 = vadd.f32 1.0, %v2845_v42 }
0x11bb   :  { %2846 = vrcp.f32 %v936_v11 }
0x11c8   :  { %v2847_v12 = vpop.eup %2846 }
0x11c9   :  { %v940_v15 = vmul.f32 %v2847_v12, %v3332_v59 }
0x1229   :  { %v943_v13 = vpop.permute.xlu0 %942 }
0x122a   :  { %v945_v14 = vmul.f32 %v2847_v12, %v943_v13 }
0x122c   :  { %947 = vrot.lane.b32.xlu1 %v945_v14, %s2998_s17 }
0x129e   :  { %v948_v16 = vpop.permute.xlu1 %947 }
0x129f   :  { %v3402_v18 = vadd.f32 %v948_v16, %v940_v15 }
0x12a1   :  { %2848 = vtanh.f32 %v3402_v18 }
0x12ae   :  { %v2849_v19 = vpop.eup %2848 }
0x12af   :  { %953 = vrot.lane.b32.xlu0 %v2849_v19, %s2998_s17 }
0x1321   :  { %v954_v20 = vpop.permute.xlu0 %953 }
0x1322   :  { %v956_v21 = vmul.f32 %v2847_v12, %v954_v20 }
0x1324   :  { %v957_v22 = vpack.c.bf16 %v956_v21, %v956_v21 }
0x1326   :  { %959 = vrot.lane.b32.xlu1 %v957_v22, %s2999_s22 }
0x1398   :  { %v960_v23 = vpop.permute.xlu1 %959 }
0x1399   :  { %2532 = vmatmul.mubr.msk.bf16.vlgmr.msra.gmra.mxu0 %vm62_vm1, %v960_v23 }
0x139a   :  { %2536 = vmatpush3.bf16.msra.mxu0 %v3162_v38  ;;  %2539 = vmatprep.mubr.msk.bf16.mxu0 %vm2997_vm0, %v2996_v1 }
0x139b   :  { %2537 = vmatprep.subr.bf16.mxu0 %v2996_v1 }
0x139e   :  { %2538 = vmatpush3.bf16.msra.mxu0 %v3168_v39 }
0x139f   :  { %2559 = vmatprep.subr.bf16.mxu0 %v2996_v1 }
0x1459   :  { %v998_v59 = vpop.f32.mrf.mxu0 }
0x145a   :  { %v1004_v24 = vsel %vm62_vm1, %v998_v59, -inf }
0x145b   :  { %1005 = vmax.xlane.f32.xlu0 %v1004_v24  ;;  %v2533_v28 = vpop.f32.mrf.mxu0 }
0x145d   :  { %v1001_v29 = vpop.f32.mrf.mxu0 }
0x145f   :  { %v2534_v30 = vpop.f32.mrf.mxu0 }
0x14e4   :  { %v1006_v31 = vpop.xlane.xlu0 %1005 }
0x14e5   :  { %v1007_v32 = vsub.f32 %v998_v59, %v1006_v31 }
0x14e7   :  { %v1008_v34 = vmul.f32 1.442695, %v1007_v32 }
0x14e9   :  { %2850 = vpow2.f32 %v1008_v34 }
0x14f6   :  { %v2851_v35 = vpop.eup %2850 }
0x14f7   :  { %1060 = vrot.lane.b32.xlu1 %v2851_v35, %s3000_s27  ;;  %v1010_v36 = vpack.c.bf16 %v2851_v35, %v2851_v35 }
0x14f9   :  { %2540 = vmatmul.mubr.msk.bf16.vlgmr.msra.gmra.mxu0 %vm62_vm1, %v1010_v36  ;;  %v3502_v36 = vld [vmem:[%s3844_s1 + $0x30] sm:$0xff]  }
0x14fa   :  { %2560 = vmatpush3.bf16.msra.mxu0 %v3043_v0  ;;  %2575 = vmatprep.mubr.msk.bf16.mxu0 %vm2997_vm0, %v2996_v1  ;;  %v1054_v0 = vsel %vm300_vm2, %v2851_v35, 0.0 }
0x14fb   :  { %2561 = vmatprep.subr.bf16.mxu0 %v2996_v1 }
0x14fe   :  { %2562 = vmatpush3.bf16.msra.mxu0 %v3051_v2 }
0x14ff   :  { %2563 = vmatprep.subr.bf16.mxu0 %v2996_v1 }
0x1502   :  { %2564 = vmatpush3.bf16.msra.mxu0 %v3062_v3 }
0x1503   :  { %2565 = vmatprep.subr.bf16.mxu0 %v2996_v1 }
0x1506   :  { %2566 = vmatpush3.bf16.msra.mxu0 %v3068_v4 }
0x1507   :  { %2567 = vmatprep.subr.bf16.mxu0 %v2996_v1 }
0x150a   :  { %2568 = vmatpush3.bf16.msra.mxu0 %v3075_v5 }
0x150b   :  { %2569 = vmatprep.subr.bf16.mxu0 %v2996_v1 }
0x150e   :  { %2570 = vmatpush3.bf16.msra.mxu0 %v3083_v6 }
0x150f   :  { %2571 = vmatprep.subr.bf16.mxu0 %v2996_v1 }
0x1512   :  { %2572 = vmatpush3.bf16.msra.mxu0 %v3090_v7 }
0x1513   :  { %2573 = vmatprep.subr.bf16.mxu0 %v2996_v1 }
0x1516   :  { %2574 = vmatpush3.bf16.msra.mxu0 %v3097_v8 }
0x1517   :  { %2595 = vmatprep.subr.bf16.mxu0 %v2996_v1 }
0x151b   :  { %1055 = vadd.xlane.f32.xlu1 %v1054_v0  ;;  %v3509_v0 = vld [vmem:[%s3844_s1 + $0x28] sm:$0xff]  }
0x1569   :  { %v1061_v2 = vpop.permute.xlu1 %1060 }
0x156a   :  { %v1063_v3 = vsel %vm300_vm2, %v1061_v2, 0.0  ;;  %v3516_v2 = vld [vmem:[%s3844_s1 + $0x20] sm:$0xff]  }
0x156b   :  { %1064 = vadd.xlane.f32.xlu0 %v1063_v3  ;;  %v3523_v3 = vld [vmem:[%s3844_s1 + $0x18] sm:$0xff]  }
0x15a4   :  { %v1056_v40 = vpop.xlane.xlu1 %1055 }
0x15a5   :  { %2852 = vrcp.f32 %v1056_v40 }
0x15b2   :  { %v2853_v41 = vpop.eup %2852 }
0x15b9   :  { %v1048_v4 = vpop.f32.mrf.mxu0 }
0x15ba   :  { %v1058_v8 = vmul.f32 %v2853_v41, %v1048_v4  ;;  %v2797_v41 = vld [vmem:[%s3843_s0 + $0x4] ss:$0 sps:$4 sm:$0xff]  }
0x15bb   :  { %v2541_v5 = vpop.f32.mrf.mxu0 }
0x15bc   :  { %v3537_v5 = vld [vmem:[%s3844_s1 + $0x8] sm:$0xff]  }
0x15bd   :  { %v1051_v6 = vpop.f32.mrf.mxu0 }
0x15bf   :  { %v2542_v37 = vpop.f32.mrf.mxu0 }
0x15c0   :  { %v3545_v37 = vld [vmem:[%s3844_s1] sm:$0xff]  }
0x15f4   :  { %v1065_v7 = vpop.xlane.xlu0 %1064 }
0x15f5   :  { %2854 = vrcp.f32 %v1065_v7 }
0x1602   :  { %v2855_v43 = vpop.eup %2854 }
0x1603   :  { %v1067_v44 = vmul.f32 %v2855_v43, %v1048_v4  ;;  %v3530_v4 = vld [vmem:[%s3844_s1 + $0x10] sm:$0xff]  }
0x1605   :  { %v1068_v45 = vsel %vm62_vm1, %v1058_v8, %v1067_v44 }
0x1606   :  { %v1069_v47 = vsel %vm316_vm3, %v1068_v45, %v956_v21 }
0x1607   :  { %v1070_v48 = vpack.c.bf16 %v1069_v47, %v1069_v47 }
0x1609   :  { %1122 = vrot.lane.b32.xlu0 %v1070_v48, %s2998_s17  ;;  %2556 = vmatmul.mubr.msk.bf16.vlgmr.msra.gmra.mxu1 %vm355_vm4, %v1070_v48 }
0x160a   :  { %2580 = vmatpush3.bf16.msra.mxu1 %v3122_v26  ;;  %2583 = vmatprep.mubr.msk.bf16.mxu1 %vm2997_vm0, %v2996_v1 }
0x160b   :  { %2581 = vmatprep.subr.bf16.mxu1 %v2996_v1 }
0x160e   :  { %2582 = vmatpush3.bf16.msra.mxu1 %v3128_v27 }
0x160f   :  { %2587 = vmatprep.subr.bf16.mxu1 %v2996_v1 }
0x167b   :  { %v1123_v55 = vpop.permute.xlu0 %1122 }
0x167c   :  { %v1126_v56 = vsel %vm62_vm1, %v1120_v52, %v1123_v55 }
0x167d   :  { %2576 = vmatmul.mubr.bf16.vlgmr.msra.gmra.mxu0 %v1126_v56 }
0x167e   :  { %2596 = vmatpush3.bf16.msra.mxu0 %v3181_v46  ;;  %2607 = vmatprep.mubr.msk.bf16.mxu0 %vm2997_vm0, %v2996_v1 }
0x167f   :  { %2597 = vmatprep.subr.bf16.mxu0 %v2996_v1 }
0x1682   :  { %2598 = vmatpush3.bf16.msra.mxu0 %v3189_v49 }
0x1683   :  { %2599 = vmatprep.subr.bf16.mxu0 %v2996_v1 }
0x1686   :  { %2600 = vmatpush3.bf16.msra.mxu0 %v3195_v50 }
0x1687   :  { %2601 = vmatprep.subr.bf16.mxu0 %v2996_v1 }
0x168a   :  { %2602 = vmatpush3.bf16.msra.mxu0 %v3202_v51 }
0x168b   :  { %2603 = vmatprep.subr.bf16.mxu0 %v2996_v1 }
0x168e   :  { %2604 = vmatpush3.bf16.msra.mxu0 %v3212_v53 }
0x168f   :  { %2605 = vmatprep.subr.bf16.mxu0 %v2996_v1 }
0x1692   :  { %2606 = vmatpush3.bf16.msra.mxu0 %v3220_v54 }
0x1693   :  { %2631 = vmatprep.subr.bf16.mxu0 %v2996_v1 }
0x16c9   :  { %v3465_v26 = vpop.f32.mrf.mxu1 }
0x16cb   :  { %v2557_v27 = vpop.f32.mrf.mxu1 }
0x16cd   :  { %v1111_v46 = vpop.f32.mrf.mxu1 }
0x16cf   :  { %v2558_v57 = vpop.f32.mrf.mxu1 }
0x173d   :  { %v1162_v58 = vpop.f32.mrf.mxu0 }
0x173e   :  { %v1163_v60 = vadd.f32 %v1162_v58, %v3111_v10 }
0x173f   :  { %v2577_v61 = vpop.f32.mrf.mxu0 }
0x1740   :  { %2856 = vtanh.f32 %v1163_v60  ;;  %v2156_v42 = vmul.f32 -1.442695, %v1163_v60  ;;  %v3562_v60 = vld [vmem:[%s3845_s2 + $0x38] sm:$0xff]   ;;  %v3571_v61 = vld [vmem:[%s3845_s2 + $0x30] sm:$0xff]  }
0x1741   :  { %v1165_v62 = vpop.f32.mrf.mxu0 }
0x1742   :  { %2858 = vpow2.f32 %v2156_v42  ;;  %v3579_v42 = vld [vmem:[%s3845_s2 + $0x28] sm:$0xff]  }
0x1743   :  { %v2578_v63 = vpop.f32.mrf.mxu0 }
0x174d   :  { %v2857_v9 = vpop.eup %2856 }
0x174e   :  { %1177 = vrot.lane.b32.xlu1 %v2857_v9, %s2998_s17 }
0x174f   :  { %v2859_v11 = vpop.eup %2858 }
0x1750   :  { %v1171_v12 = vadd.f32 1.0, %v2859_v11 }
0x1752   :  { %2860 = vrcp.f32 %v1171_v12 }
0x175f   :  { %v2861_v13 = vpop.eup %2860 }
0x1760   :  { %v1175_v16 = vmul.f32 %v2861_v13, %v3402_v18 }
0x17c0   :  { %v1178_v14 = vpop.permute.xlu1 %1177 }
0x17c1   :  { %v1180_v15 = vmul.f32 %v2861_v13, %v1178_v14 }
0x17c3   :  { %1182 = vrot.lane.b32.xlu0 %v1180_v15, %s2998_s17 }
0x1835   :  { %v1183_v10 = vpop.permute.xlu0 %1182 }
0x1836   :  { %v3471_v19 = vadd.f32 %v1183_v10, %v1175_v16 }
0x1838   :  { %2862 = vtanh.f32 %v3471_v19 }
0x1845   :  { %v2863_v20 = vpop.eup %2862 }
0x1846   :  { %1188 = vrot.lane.b32.xlu1 %v2863_v20, %s2998_s17 }
0x18b8   :  { %v1189_v21 = vpop.permute.xlu1 %1188 }
0x18b9   :  { %v3475_v22 = vmul.f32 %v2861_v13, %v1189_v21 }
0x18bb   :  { %v1192_v23 = vpack.c.bf16 %v3475_v22, %v3475_v22 }
0x18bd   :  { %1194 = vrot.lane.b32.xlu0 %v1192_v23, %s2999_s22 }
0x192f   :  { %v1195_v59 = vpop.permute.xlu0 %1194 }
0x1930   :  { %2584 = vmatmul.mubr.msk.bf16.vlgmr.msra.gmra.mxu1 %vm62_vm1, %v1195_v59 }
0x1931   :  { %2588 = vmatpush3.bf16.msra.mxu1 %v3162_v38  ;;  %2591 = vmatprep.mubr.msk.bf16.mxu1 %vm2997_vm0, %v2996_v1 }
0x1932   :  { %2589 = vmatprep.subr.bf16.mxu1 %v2996_v1 }
0x1935   :  { %2590 = vmatpush3.bf16.msra.mxu1 %v3168_v39  ;;  %v3493_v39 = vld [vmem:[%s3844_s1 + $0x38] sm:$0xff]  }
0x1936   :  { %2611 = vmatprep.subr.bf16.mxu1 %v2996_v1 }
0x19f0   :  { %v1233_v18 = vpop.f32.mrf.mxu1 }
0x19f1   :  { %v1239_v24 = vsel %vm62_vm1, %v1233_v18, -inf }
0x19f2   :  { %1240 = vmax.xlane.f32.xlu1 %v1239_v24  ;;  %v2585_v28 = vpop.f32.mrf.mxu1 }
0x19f4   :  { %v1236_v29 = vpop.f32.mrf.mxu1 }
0x19f6   :  { %v2586_v30 = vpop.f32.mrf.mxu1 }
0x1a7b   :  { %v1241_v31 = vpop.xlane.xlu1 %1240 }
0x1a7c   :  { %v1242_v32 = vsub.f32 %v1233_v18, %v1241_v31 }
0x1a7e   :  { %v1243_v34 = vmul.f32 1.442695, %v1242_v32 }
0x1a80   :  { %2864 = vpow2.f32 %v1243_v34 }
0x1a8d   :  { %v2865_v38 = vpop.eup %2864 }
0x1a8e   :  { %1295 = vrot.lane.b32.xlu0 %v2865_v38, %s3000_s27  ;;  %v1245_v35 = vpack.c.bf16 %v2865_v38, %v2865_v38  ;;  %v1289_v6 = vsel %vm300_vm2, %v2865_v38, 0.0  ;;  %v3628_v38 = vld [vmem:[%s3845_s2 + $0x40] sm:$0xff]  }
0x1a90   :  { %2592 = vmatmul.mubr.msk.bf16.vlgmr.msra.gmra.mxu1 %vm62_vm1, %v1245_v35 }
0x1a91   :  { %2612 = vmatpush3.bf16.msra.mxu1 %v3493_v39  ;;  %2627 = vmatprep.mubr.msk.bf16.mxu1 %vm2997_vm0, %v2996_v1 }
0x1a92   :  { %2613 = vmatprep.subr.bf16.mxu1 %v2996_v1 }
0x1a95   :  { %2614 = vmatpush3.bf16.msra.mxu1 %v3502_v36 }
0x1a96   :  { %2615 = vmatprep.subr.bf16.mxu1 %v2996_v1 }
0x1a99   :  { %2616 = vmatpush3.bf16.msra.mxu1 %v3509_v0 }
0x1a9a   :  { %2617 = vmatprep.subr.bf16.mxu1 %v2996_v1 }
0x1a9d   :  { %2618 = vmatpush3.bf16.msra.mxu1 %v3516_v2 }
0x1a9e   :  { %2619 = vmatprep.subr.bf16.mxu1 %v2996_v1 }
0x1aa1   :  { %2620 = vmatpush3.bf16.msra.mxu1 %v3523_v3 }
0x1aa2   :  { %2621 = vmatprep.subr.bf16.mxu1 %v2996_v1 }
0x1aa5   :  { %2622 = vmatpush3.bf16.msra.mxu1 %v3530_v4 }
0x1aa6   :  { %2623 = vmatprep.subr.bf16.mxu1 %v2996_v1 }
0x1aa9   :  { %2624 = vmatpush3.bf16.msra.mxu1 %v3537_v5 }
0x1aaa   :  { %2625 = vmatprep.subr.bf16.mxu1 %v2996_v1 }
0x1aad   :  { %1290 = vadd.xlane.f32.xlu0 %v1289_v6  ;;  %2626 = vmatpush3.bf16.msra.mxu1 %v3545_v37 }
0x1aae   :  { %2647 = vmatprep.subr.bf16.mxu1 %v2996_v1 }
0x1ac3   :  { %1354 = vrot.lane.b32.xlu0 %v2797_v41, %s3001_s16 }
0x1b00   :  { %v1296_v40 = vpop.permute.xlu0 %1295 }
0x1b01   :  { %v1298_v7 = vsel %vm300_vm2, %v1296_v40, 0.0 }
0x1b02   :  { %1299 = vadd.xlane.f32.xlu1 %v1298_v7 }
0x1b36   :  { %v1291_v47 = vpop.xlane.xlu0 %1290 }
0x1b37   :  { %2866 = vrcp.f32 %v1291_v47 }
0x1b3a   :  { %v1355_v62 = vpop.permute.xlu0 %1354 }
0x1b44   :  { %v2867_v52 = vpop.eup %2866 }
0x1b50   :  { %v1283_v43 = vpop.f32.mrf.mxu1 }
0x1b51   :  { %v1293_v56 = vmul.f32 %v2867_v52, %v1283_v43 }
0x1b52   :  { %v2593_v8 = vpop.f32.mrf.mxu1 }
0x1b54   :  { %v1286_v44 = vpop.f32.mrf.mxu1 }
0x1b56   :  { %v2594_v45 = vpop.f32.mrf.mxu1 }
0x1b8b   :  { %v1300_v48 = vpop.xlane.xlu1 %1299 }
0x1b8c   :  { %2868 = vrcp.f32 %v1300_v48 }
0x1b99   :  { %v2869_v55 = vpop.eup %2868 }
0x1b9a   :  { %v1302_v27 = vmul.f32 %v2869_v55, %v1283_v43 }
0x1b9c   :  { %v1303_v46 = vsel %vm62_vm1, %v1293_v56, %v1302_v27  ;;  %v2798_v56 = vld [vmem:[%s3843_s0 + $0x4] ss:$0 sps:$4 sm:$0xff]  }
0x1b9d   :  { %v1304_v57 = vsel %vm316_vm3, %v1303_v46, %v3475_v22 }
0x1b9e   :  { %v1305_v58 = vpack.c.bf16 %v1304_v57, %v1304_v57 }
0x1ba0   :  { %1357 = vrot.lane.b32.xlu1 %v1305_v58, %s2998_s17  ;;  %2608 = vmatmul.mubr.msk.bf16.vlgmr.msra.gmra.mxu0 %vm355_vm4, %v1305_v58 }
0x1ba1   :  { %2632 = vmatpush3.bf16.msra.mxu0 %v3562_v60  ;;  %2635 = vmatprep.mubr.msk.bf16.mxu0 %vm2997_vm0, %v2996_v1 }
0x1ba2   :  { %2633 = vmatprep.subr.bf16.mxu0 %v2996_v1 }
0x1ba5   :  { %2634 = vmatpush3.bf16.msra.mxu0 %v3571_v61 }
0x1ba6   :  { %2639 = vmatprep.subr.bf16.mxu0 %v2996_v1 }
0x1c12   :  { %v1358_v63 = vpop.permute.xlu1 %1357 }
0x1c13   :  { %v1361_v9 = vsel %vm62_vm1, %v1355_v62, %v1358_v63 }
0x1c14   :  { %2628 = vmatmul.mubr.bf16.vlgmr.msra.gmra.mxu1 %v1361_v9 }
0x1c15   :  { %2648 = vmatpush3.bf16.msra.mxu1 %v3579_v42  ;;  %2659 = vmatprep.mubr.msk.bf16.mxu1 %vm2997_vm0, %v2996_v1 }
0x1c16   :  { %2649 = vmatprep.subr.bf16.mxu1 %v2996_v1 }
0x1c19   :  { %2650 = vmatpush3.bf16.msra.mxu1 %v3189_v49 }
0x1c1a   :  { %2651 = vmatprep.subr.bf16.mxu1 %v2996_v1 }
0x1c1d   :  { %2652 = vmatpush3.bf16.msra.mxu1 %v3195_v50 }
0x1c1e   :  { %2653 = vmatprep.subr.bf16.mxu1 %v2996_v1 }
0x1c21   :  { %2654 = vmatpush3.bf16.msra.mxu1 %v3202_v51  ;;  %v3600_v51 = vld [vmem:[%s3846_s3] sm:$0xff] }
0x1c22   :  { %2655 = vmatprep.subr.bf16.mxu1 %v2996_v1 }
0x1c25   :  { %2656 = vmatpush3.bf16.msra.mxu1 %v3212_v53 }
0x1c26   :  { %2657 = vmatprep.subr.bf16.mxu1 %v2996_v1 }
0x1c29   :  { %2658 = vmatpush3.bf16.msra.mxu1 %v3220_v54 }
0x1c2a   :  { %2683 = vmatprep.subr.bf16.mxu1 %v2996_v1 }
0x1c60   :  { %v1343_v11 = vpop.f32.mrf.mxu0 }
0x1c61   :  { %v1344_v49 = vadd.f32 %v1343_v11, %v3258_v17 }
0x1c62   :  { %v2609_v12 = vpop.f32.mrf.mxu0 }
0x1c63   :  { %1349 = vst.msk [vmem:[#allocation2 + $0x8] sm:$0xff] %vm62_vm1, %v1344_v49 }
0x1c64   :  { %v1346_v50 = vpop.f32.mrf.mxu0 }
0x1c66   :  { %v2610_v13 = vpop.f32.mrf.mxu0 }
0x1cd4   :  { %v1397_v14 = vpop.f32.mrf.mxu1 }
0x1cd5   :  { %v1398_v53 = vadd.f32 %v3600_v51, %v1397_v14 }
0x1cd6   :  { %v2629_v15 = vpop.f32.mrf.mxu1 }
0x1cd7   :  { %2870 = vtanh.f32 %v1398_v53  ;;  %v2161_v17 = vmul.f32 -1.442695, %v1398_v53 }
0x1cd8   :  { %v1400_v54 = vpop.f32.mrf.mxu1 }
0x1cd9   :  { %2872 = vpow2.f32 %v2161_v17  ;;  %v3692_v17 = vld [vmem:[%s3845_s2 + $0x10] sm:$0xff]  }
0x1cda   :  { %v2630_v16 = vpop.f32.mrf.mxu1 }
0x1cdb   :  { %v3678_v16 = vld [vmem:[%s3845_s2 + $0x20] sm:$0xff]  }
0x1ce4   :  { %v2871_v10 = vpop.eup %2870 }
0x1ce5   :  { %1412 = vrot.lane.b32.xlu1 %v2871_v10, %s2998_s17  ;;  %v3685_v10 = vld [vmem:[%s3845_s2 + $0x18] sm:$0xff]  }
0x1ce6   :  { %v2873_v20 = vpop.eup %2872 }
0x1ce7   :  { %v1406_v21 = vadd.f32 1.0, %v2873_v20  ;;  %v3699_v20 = vld [vmem:[%s3845_s2 + $0x8] sm:$0xff]  }
0x1ce9   :  { %2874 = vrcp.f32 %v1406_v21  ;;  %v3706_v21 = vld [vmem:[%s3845_s2] sm:$0xff]  }
0x1cf6   :  { %v2875_v22 = vpop.eup %2874 }
0x1cf7   :  { %v1410_v18 = vmul.f32 %v2875_v22, %v3471_v19  ;;  %v3619_v19 = vld [vmem:[%s3845_s2 + $0x48] sm:$0xff]  }
0x1d57   :  { %v1413_v23 = vpop.permute.xlu1 %1412 }
0x1d58   :  { %v1415_v59 = vmul.f32 %v2875_v22, %v1413_v23 }
0x1d5a   :  { %1417 = vrot.lane.b32.xlu0 %v1415_v59, %s2998_s17 }
0x1dcc   :  { %v1418_v24 = vpop.permute.xlu0 %1417 }
0x1dcd   :  { %v3606_v28 = vadd.f32 %v1418_v24, %v1410_v18 }
0x1dcf   :  { %2876 = vtanh.f32 %v3606_v28 }
0x1ddc   :  { %v2877_v29 = vpop.eup %2876 }
0x1ddd   :  { %1423 = vrot.lane.b32.xlu1 %v2877_v29, %s2998_s17 }
0x1e4f   :  { %v1424_v30 = vpop.permute.xlu1 %1423 }
0x1e50   :  { %v3610_v31 = vmul.f32 %v2875_v22, %v1424_v30 }
0x1e52   :  { %v1427_v32 = vpack.c.bf16 %v3610_v31, %v3610_v31 }
0x1e54   :  { %1429 = vrot.lane.b32.xlu0 %v1427_v32, %s2999_s22 }
0x1ec6   :  { %v1430_v34 = vpop.permute.xlu0 %1429 }
0x1ec7   :  { %2636 = vmatmul.mubr.msk.bf16.vlgmr.msra.gmra.mxu0 %vm62_vm1, %v1430_v34 }
0x1ec8   :  { %2640 = vmatpush3.bf16.msra.mxu0 %v3619_v19  ;;  %2643 = vmatprep.mubr.msk.bf16.mxu0 %vm2997_vm0, %v2996_v1 }
0x1ec9   :  { %2641 = vmatprep.subr.bf16.mxu0 %v2996_v1 }
0x1ecc   :  { %2642 = vmatpush3.bf16.msra.mxu0 %v3628_v38 }
0x1ecd   :  { %2663 = vmatprep.subr.bf16.mxu0 %v2996_v1 }
0x1f87   :  { %v1468_v35 = vpop.f32.mrf.mxu0 }
0x1f88   :  { %v1474_v6 = vsel %vm62_vm1, %v1468_v35, -inf }
0x1f89   :  { %1475 = vmax.xlane.f32.xlu1 %v1474_v6  ;;  %v2637_v40 = vpop.f32.mrf.mxu0 }
0x1f8b   :  { %v1471_v7 = vpop.f32.mrf.mxu0 }
0x1f8d   :  { %v2638_v41 = vpop.f32.mrf.mxu0 }
0x2012   :  { %v1476_v43 = vpop.xlane.xlu1 %1475 }
0x2013   :  { %v1477_v8 = vsub.f32 %v1468_v35, %v1476_v43 }
0x2015   :  { %v1478_v44 = vmul.f32 1.442695, %v1477_v8 }
0x2017   :  { %2878 = vpow2.f32 %v1478_v44 }
0x2024   :  { %v2879_v45 = vpop.eup %2878 }
0x2025   :  { %1530 = vrot.lane.b32.xlu0 %v2879_v45, %s3000_s27  ;;  %v1480_v47 = vpack.c.bf16 %v2879_v45, %v2879_v45  ;;  %v1524_v48 = vsel %vm300_vm2, %v2879_v45, 0.0 }
0x2027   :  { %2644 = vmatmul.mubr.msk.bf16.vlgmr.msra.gmra.mxu0 %vm62_vm1, %v1480_v47 }
0x2028   :  { %2664 = vmatpush3.bf16.msra.mxu0 %v3493_v39  ;;  %2679 = vmatprep.mubr.msk.bf16.mxu0 %vm2997_vm0, %v2996_v1 }
0x2029   :  { %2665 = vmatprep.subr.bf16.mxu0 %v2996_v1 }
0x202c   :  { %2666 = vmatpush3.bf16.msra.mxu0 %v3502_v36 }
0x202d   :  { %2667 = vmatprep.subr.bf16.mxu0 %v2996_v1 }
0x2030   :  { %2668 = vmatpush3.bf16.msra.mxu0 %v3509_v0 }
0x2031   :  { %2669 = vmatprep.subr.bf16.mxu0 %v2996_v1 }
0x2034   :  { %2670 = vmatpush3.bf16.msra.mxu0 %v3516_v2 }
0x2035   :  { %2671 = vmatprep.subr.bf16.mxu0 %v2996_v1 }
0x2038   :  { %2672 = vmatpush3.bf16.msra.mxu0 %v3523_v3 }
0x2039   :  { %2673 = vmatprep.subr.bf16.mxu0 %v2996_v1 }
0x203c   :  { %2674 = vmatpush3.bf16.msra.mxu0 %v3530_v4 }
0x203d   :  { %2675 = vmatprep.subr.bf16.mxu0 %v2996_v1 }
0x2040   :  { %2676 = vmatpush3.bf16.msra.mxu0 %v3537_v5 }
0x2041   :  { %2677 = vmatprep.subr.bf16.mxu0 %v2996_v1 }
0x2044   :  { %1525 = vadd.xlane.f32.xlu0 %v1524_v48  ;;  %2678 = vmatpush3.bf16.msra.mxu0 %v3545_v37 }
0x2045   :  { %2699 = vmatprep.subr.bf16.mxu0 %v2996_v1 }
0x205a   :  { %1593 = vrot.lane.b32.xlu0 %v2798_v56, %s2999_s22 }
0x2097   :  { %v1531_v52 = vpop.permute.xlu0 %1530 }
0x2098   :  { %v1533_v55 = vsel %vm300_vm2, %v1531_v52, 0.0 }
0x2099   :  { %1534 = vadd.xlane.f32.xlu1 %v1533_v55 }
0x20cd   :  { %v1526_v62 = vpop.xlane.xlu0 %1525 }
0x20ce   :  { %2880 = vrcp.f32 %v1526_v62 }
0x20d1   :  { %v1594_v53 = vpop.permute.xlu0 %1593 }
0x20db   :  { %v2881_v9 = vpop.eup %2880 }
0x20e7   :  { %v1518_v27 = vpop.f32.mrf.mxu0 }
0x20e8   :  { %v1528_v49 = vmul.f32 %v2881_v9, %v1518_v27 }
0x20e9   :  { %v2645_v46 = vpop.f32.mrf.mxu0 }
0x20eb   :  { %v1521_v57 = vpop.f32.mrf.mxu0 }
0x20ed   :  { %v2646_v58 = vpop.f32.mrf.mxu0 }
0x2122   :  { %v1535_v63 = vpop.xlane.xlu1 %1534 }
0x2123   :  { %2882 = vrcp.f32 %v1535_v63 }
0x2130   :  { %v2883_v11 = vpop.eup %2882 }
0x2131   :  { %v1537_v12 = vmul.f32 %v2883_v11, %v1518_v27 }
0x2133   :  { %v1538_v50 = vsel %vm62_vm1, %v1528_v49, %v1537_v12 }
0x2134   :  { %v1539_v13 = vsel %vm316_vm3, %v1538_v50, %v3610_v31 }
0x2135   :  { %v1540_v14 = vpack.c.bf16 %v1539_v13, %v1539_v13 }
0x2137   :  { %1596 = vrot.lane.b32.xlu1 %v1540_v14, %s2998_s17  ;;  %2660 = vmatmul.mubr.msk.bf16.vlgmr.msra.gmra.mxu1 %vm355_vm4, %v1540_v14 }
0x2138   :  { %2684 = vmatpush3.bf16.msra.mxu1 %v3562_v60  ;;  %2687 = vmatprep.mubr.msk.bf16.mxu1 %vm2997_vm0, %v2996_v1 }
0x2139   :  { %2685 = vmatprep.subr.bf16.mxu1 %v2996_v1 }
0x213c   :  { %2686 = vmatpush3.bf16.msra.mxu1 %v3571_v61 }
0x213d   :  { %2691 = vmatprep.subr.bf16.mxu1 %v2996_v1 }
0x21a9   :  { %v1597_v15 = vpop.permute.xlu1 %1596 }
0x21aa   :  { %v1600_v54 = vsel %vm62_vm1, %v1594_v53, %v1597_v15 }
0x21ab   :  { %2680 = vmatmul.mubr.bf16.vlgmr.msra.gmra.mxu0 %v1600_v54 }
0x21ac   :  { %2700 = vmatpush3.bf16.msra.mxu0 %v3579_v42  ;;  %2711 = vmatprep.mubr.msk.bf16.mxu0 %vm2997_vm0, %v2996_v1 }
0x21ad   :  { %2701 = vmatprep.subr.bf16.mxu0 %v2996_v1 }
0x21b0   :  { %2702 = vmatpush3.bf16.msra.mxu0 %v3678_v16 }
0x21b1   :  { %2703 = vmatprep.subr.bf16.mxu0 %v2996_v1 }
0x21b4   :  { %2704 = vmatpush3.bf16.msra.mxu0 %v3685_v10 }
0x21b5   :  { %2705 = vmatprep.subr.bf16.mxu0 %v2996_v1 }
0x21b8   :  { %2706 = vmatpush3.bf16.msra.mxu0 %v3692_v17 }
0x21b9   :  { %2707 = vmatprep.subr.bf16.mxu0 %v2996_v1 }
0x21bc   :  { %2708 = vmatpush3.bf16.msra.mxu0 %v3699_v20 }
0x21bd   :  { %2709 = vmatprep.subr.bf16.mxu0 %v2996_v1 }
0x21c0   :  { %2710 = vmatpush3.bf16.msra.mxu0 %v3706_v21 }
0x21c1   :  { %2735 = vmatprep.subr.bf16.mxu0 %v2996_v1 }
0x21f7   :  { %v3710_v22 = vpop.f32.mrf.mxu1 }
0x21f9   :  { %v2661_v23 = vpop.f32.mrf.mxu1 }
0x21fb   :  { %v1581_v59 = vpop.f32.mrf.mxu1 }
0x21fd   :  { %v2662_v18 = vpop.f32.mrf.mxu1 }
0x226b   :  { %v1636_v24 = vpop.f32.mrf.mxu0 }
0x226c   :  { %v1637_v29 = vadd.f32 %v3600_v51, %v1636_v24 }
0x226d   :  { %v2681_v30 = vpop.f32.mrf.mxu0 }
0x226e   :  { %2884 = vtanh.f32 %v1637_v29  ;;  %v2166_v35 = vmul.f32 -1.442695, %v1637_v29 }
0x226f   :  { %v1639_v31 = vpop.f32.mrf.mxu0 }
0x2270   :  { %2886 = vpow2.f32 %v2166_v35 }
0x2271   :  { %v2682_v32 = vpop.f32.mrf.mxu0 }
0x227b   :  { %v2885_v34 = vpop.eup %2884 }
0x227c   :  { %1651 = vrot.lane.b32.xlu1 %v2885_v34, %s2998_s17 }
0x227d   :  { %v2887_v6 = vpop.eup %2886 }
0x227e   :  { %v1645_v40 = vadd.f32 1.0, %v2887_v6 }
0x2280   :  { %2888 = vrcp.f32 %v1645_v40 }
0x228d   :  { %v2889_v7 = vpop.eup %2888 }
0x228e   :  { %v1649_v8 = vmul.f32 %v2889_v7, %v3606_v28 }
0x22ee   :  { %v1652_v41 = vpop.permute.xlu1 %1651 }
0x22ef   :  { %v1654_v43 = vmul.f32 %v2889_v7, %v1652_v41 }
0x22f1   :  { %1656 = vrot.lane.b32.xlu0 %v1654_v43, %s2998_s17 }
0x2363   :  { %v1657_v44 = vpop.permute.xlu0 %1656 }
0x2364   :  { %v3716_v45 = vadd.f32 %v1657_v44, %v1649_v8 }
0x2366   :  { %2890 = vtanh.f32 %v3716_v45 }
0x2373   :  { %v2891_v47 = vpop.eup %2890 }
0x2374   :  { %1662 = vrot.lane.b32.xlu1 %v2891_v47, %s2998_s17 }
0x23e6   :  { %v1663_v48 = vpop.permute.xlu1 %1662 }
0x23e7   :  { %v1665_v52 = vmul.f32 %v2889_v7, %v1663_v48 }
0x23e9   :  { %v1666_v55 = vpack.c.bf16 %v1665_v52, %v1665_v52 }
0x23eb   :  { %1668 = vrot.lane.b32.xlu0 %v1666_v55, %s2999_s22 }
0x245d   :  { %v1669_v56 = vpop.permute.xlu0 %1668 }
0x245e   :  { %2688 = vmatmul.mubr.msk.bf16.vlgmr.msra.gmra.mxu1 %vm62_vm1, %v1669_v56 }
0x245f   :  { %2692 = vmatpush3.bf16.msra.mxu1 %v3619_v19  ;;  %2695 = vmatprep.mubr.msk.bf16.mxu1 %vm2997_vm0, %v2996_v1 }
0x2460   :  { %2693 = vmatprep.subr.bf16.mxu1 %v2996_v1 }
0x2463   :  { %2694 = vmatpush3.bf16.msra.mxu1 %v3628_v38 }
0x2464   :  { %2715 = vmatprep.subr.bf16.mxu1 %v2996_v1 }
0x251e   :  { %v1707_v28 = vpop.f32.mrf.mxu1 }
0x251f   :  { %v1713_v27 = vsel %vm62_vm1, %v1707_v28, -inf }
0x2520   :  { %1714 = vmax.xlane.f32.xlu1 %v1713_v27  ;;  %v2689_v46 = vpop.f32.mrf.mxu1 }
0x2522   :  { %v1710_v57 = vpop.f32.mrf.mxu1 }
0x2524   :  { %v2690_v58 = vpop.f32.mrf.mxu1 }
0x25a9   :  { %v1715_v62 = vpop.xlane.xlu1 %1714 }
0x25aa   :  { %v1716_v63 = vsub.f32 %v1707_v28, %v1715_v62 }
0x25ac   :  { %v1717_v9 = vmul.f32 1.442695, %v1716_v63 }
0x25ae   :  { %2892 = vpow2.f32 %v1717_v9 }
0x25bb   :  { %v2893_v11 = vpop.eup %2892 }
0x25bc   :  { %1769 = vrot.lane.b32.xlu0 %v2893_v11, %s3000_s27  ;;  %v1719_v49 = vpack.c.bf16 %v2893_v11, %v2893_v11 }
0x25be   :  { %2696 = vmatmul.mubr.msk.bf16.vlgmr.msra.gmra.mxu1 %vm62_vm1, %v1719_v49 }
0x25bf   :  { %2716 = vmatpush3.bf16.msra.mxu1 %v3493_v39  ;;  %2731 = vmatprep.mubr.msk.bf16.mxu1 %vm2997_vm0, %v2996_v1  ;;  %v1763_v39 = vsel %vm300_vm2, %v2893_v11, 0.0 }
0x25c0   :  { %2717 = vmatprep.subr.bf16.mxu1 %v2996_v1 }
0x25c3   :  { %2718 = vmatpush3.bf16.msra.mxu1 %v3502_v36 }
0x25c4   :  { %2719 = vmatprep.subr.bf16.mxu1 %v2996_v1 }
0x25c7   :  { %2720 = vmatpush3.bf16.msra.mxu1 %v3509_v0 }
0x25c8   :  { %2721 = vmatprep.subr.bf16.mxu1 %v2996_v1 }
0x25cb   :  { %2722 = vmatpush3.bf16.msra.mxu1 %v3516_v2  ;;  %v2799_v2 = vld [vmem:[%s3843_s0 + $0x4] ss:$0 sps:$4 sm:$0xff]  }
0x25cc   :  { %2723 = vmatprep.subr.bf16.mxu1 %v2996_v1 }
0x25cf   :  { %2724 = vmatpush3.bf16.msra.mxu1 %v3523_v3 }
0x25d0   :  { %2725 = vmatprep.subr.bf16.mxu1 %v2996_v1 }
0x25d3   :  { %2726 = vmatpush3.bf16.msra.mxu1 %v3530_v4 }
0x25d4   :  { %2727 = vmatprep.subr.bf16.mxu1 %v2996_v1 }
0x25d7   :  { %2728 = vmatpush3.bf16.msra.mxu1 %v3537_v5 }
0x25d8   :  { %2729 = vmatprep.subr.bf16.mxu1 %v2996_v1 }
0x25db   :  { %1764 = vadd.xlane.f32.xlu0 %v1763_v39  ;;  %2730 = vmatpush3.bf16.msra.mxu1 %v3545_v37 }
0x25dc   :  { %2751 = vmatprep.subr.bf16.mxu1 %v2996_v1 }
0x25f1   :  { %1832 = vrot.lane.b32.xlu0 %v2799_v2, %s2998_s17 }
0x262e   :  { %v1770_v36 = vpop.permute.xlu0 %1769 }
0x262f   :  { %v1772_v0 = vsel %vm300_vm2, %v1770_v36, 0.0 }
0x2630   :  { %1773 = vadd.xlane.f32.xlu1 %v1772_v0 }
0x2664   :  { %v1765_v50 = vpop.xlane.xlu0 %1764 }
0x2665   :  { %2894 = vrcp.f32 %v1765_v50 }
0x2668   :  { %v1833_v18 = vpop.permute.xlu0 %1832 }
0x2672   :  { %v2895_v37 = vpop.eup %2894 }
0x267e   :  { %v1757_v3 = vpop.f32.mrf.mxu1 }
0x267f   :  { %v1767_v53 = vmul.f32 %v2895_v37, %v1757_v3 }
0x2680   :  { %v2697_v4 = vpop.f32.mrf.mxu1 }
0x2682   :  { %v1760_v5 = vpop.f32.mrf.mxu1 }
0x2684   :  { %v2698_v12 = vpop.f32.mrf.mxu1 }
0x26b9   :  { %v1774_v13 = vpop.xlane.xlu1 %1773 }
0x26ba   :  { %2896 = vrcp.f32 %v1774_v13 }
0x26c7   :  { %v2897_v14 = vpop.eup %2896 }
0x26c8   :  { %v1776_v15 = vmul.f32 %v2897_v14, %v1757_v3 }
0x26ca   :  { %v1777_v54 = vsel %vm62_vm1, %v1767_v53, %v1776_v15 }
0x26cb   :  { %v1778_v23 = vsel %vm316_vm3, %v1777_v54, %v1665_v52 }
0x26cc   :  { %v1779_v59 = vpack.c.bf16 %v1778_v23, %v1778_v23 }
0x26ce   :  { %1835 = vrot.lane.b32.xlu1 %v1779_v59, %s2998_s17  ;;  %2712 = vmatmul.mubr.msk.bf16.vlgmr.msra.gmra.mxu0 %vm355_vm4, %v1779_v59 }
0x26cf   :  { %2736 = vmatpush3.bf16.msra.mxu0 %v3562_v60  ;;  %2739 = vmatprep.mubr.msk.bf16.mxu0 %vm2997_vm0, %v2996_v1 }
0x26d0   :  { %2737 = vmatprep.subr.bf16.mxu0 %v2996_v1 }
0x26d3   :  { %2738 = vmatpush3.bf16.msra.mxu0 %v3571_v61 }
0x26d4   :  { %2743 = vmatprep.subr.bf16.mxu0 %v2996_v1 }
0x2740   :  { %v1836_v24 = vpop.permute.xlu1 %1835 }
0x2741   :  { %v1839_v29 = vsel %vm62_vm1, %v1833_v18, %v1836_v24 }
0x2742   :  { %2732 = vmatmul.mubr.bf16.vlgmr.msra.gmra.mxu1 %v1839_v29 }
0x2743   :  { %2752 = vmatpush3.bf16.msra.mxu1 %v3579_v42  ;;  %2763 = vmatprep.mubr.msk.bf16.mxu1 %vm2997_vm0, %v2996_v1 }
0x2744   :  { %2753 = vmatprep.subr.bf16.mxu1 %v2996_v1 }
0x2747   :  { %2754 = vmatpush3.bf16.msra.mxu1 %v3678_v16 }
0x2748   :  { %2755 = vmatprep.subr.bf16.mxu1 %v2996_v1 }
0x274b   :  { %2756 = vmatpush3.bf16.msra.mxu1 %v3685_v10 }
0x274c   :  { %2757 = vmatprep.subr.bf16.mxu1 %v2996_v1 }
0x274f   :  { %2758 = vmatpush3.bf16.msra.mxu1 %v3692_v17 }
0x2750   :  { %2759 = vmatprep.subr.bf16.mxu1 %v2996_v1 }
0x2753   :  { %2760 = vmatpush3.bf16.msra.mxu1 %v3699_v20 }
0x2754   :  { %2761 = vmatprep.subr.bf16.mxu1 %v2996_v1 }
0x2757   :  { %2762 = vmatpush3.bf16.msra.mxu1 %v3706_v21 }
0x278e   :  { %v1817_v60 = vpop.f32.mrf.mxu0 }
0x2790   :  { %v2713_v61 = vpop.f32.mrf.mxu0 }
0x2792   :  { %v1820_v42 = vpop.f32.mrf.mxu0 }
0x2794   :  { %v2714_v16 = vpop.f32.mrf.mxu0 }
0x2802   :  { %v1875_v30 = vpop.f32.mrf.mxu1 }
0x2803   :  { %v1876_v31 = vadd.f32 %v3600_v51, %v1875_v30 }
0x2804   :  { %v2733_v10 = vpop.f32.mrf.mxu1 }
0x2805   :  { %2898 = vtanh.f32 %v1876_v31  ;;  %v2171_v35 = vmul.f32 -1.442695, %v1876_v31 }
0x2806   :  { %v1878_v32 = vpop.f32.mrf.mxu1 }
0x2807   :  { %2900 = vpow2.f32 %v2171_v35 }
0x2808   :  { %v2734_v34 = vpop.f32.mrf.mxu1 }
0x2812   :  { %v2899_v17 = vpop.eup %2898 }
0x2813   :  { %1890 = vrot.lane.b32.xlu1 %v2899_v17, %s2998_s17 }
0x2814   :  { %v2901_v20 = vpop.eup %2900 }
0x2815   :  { %v1884_v6 = vadd.f32 1.0, %v2901_v20 }
0x2817   :  { %2902 = vrcp.f32 %v1884_v6 }
0x2824   :  { %v2903_v21 = vpop.eup %2902 }
0x2825   :  { %v1888_v41 = vmul.f32 %v2903_v21, %v3716_v45 }
0x2885   :  { %v1891_v40 = vpop.permute.xlu1 %1890 }
0x2886   :  { %v1893_v7 = vmul.f32 %v2903_v21, %v1891_v40 }
0x2888   :  { %1895 = vrot.lane.b32.xlu0 %v1893_v7, %s2998_s17 }
0x28fa   :  { %v1896_v51 = vpop.permute.xlu0 %1895 }
0x28fb   :  { %v1898_v43 = vadd.f32 %v1896_v51, %v1888_v41 }
0x28fd   :  { %2904 = vtanh.f32 %v1898_v43 }
0x290a   :  { %v2905_v8 = vpop.eup %2904 }
0x290b   :  { %1901 = vrot.lane.b32.xlu1 %v2905_v8, %s2998_s17 }
0x297d   :  { %v1902_v44 = vpop.permute.xlu1 %1901 }
0x297e   :  { %v3784_v47 = vmul.f32 %v2903_v21, %v1902_v44 }
0x2980   :  { %v1905_v48 = vpack.c.bf16 %v3784_v47, %v3784_v47 }
0x2982   :  { %1907 = vrot.lane.b32.xlu0 %v1905_v48, %s2999_s22 }
0x29f4   :  { %v1908_v52 = vpop.permute.xlu0 %1907 }
0x29f5   :  { %2740 = vmatmul.mubr.msk.bf16.vlgmr.msra.gmra.mxu0 %vm62_vm1, %v1908_v52 }
0x29f6   :  { %2744 = vmatpush3.bf16.msra.mxu0 %v3619_v19  ;;  %2747 = vmatprep.mubr.msk.bf16.mxu0 %vm2997_vm0, %v2996_v1 }
0x29f7   :  { %2745 = vmatprep.subr.bf16.mxu0 %v2996_v1 }
0x29fa   :  { %2746 = vmatpush3.bf16.msra.mxu0 %v3628_v38  ;;  %v3802_v38 = vld [vmem:[%s3846_s3 + $0x8] sm:$0xff]  ;;  %s3002_s3 = smov [#allocation4]  }
0x29fb   :  { %v629_v63 = vadd.f32 %v3802_v38, %v3326_v33  ;;  %v1818_v9 = vadd.f32 %v3802_v38, %v1817_v60  ;;  %v1109_v11 = vadd.f32 %v3802_v38, %v3465_v26  ;;  %v1579_v33 = vadd.f32 %v3802_v38, %v3710_v22 }
0x29fc   :  { %v869_v36 = vadd.f32 %v3802_v38, %v3396_v25 }
0x2ab5   :  { %v1946_v45 = vpop.f32.mrf.mxu0 }
0x2ab6   :  { %v1952_v55 = vsel %vm62_vm1, %v1946_v45, -inf }
0x2ab7   :  { %1953 = vmax.xlane.f32.xlu1 %v1952_v55  ;;  %v2741_v56 = vpop.f32.mrf.mxu0 }
0x2ab9   :  { %v1949_v28 = vpop.f32.mrf.mxu0 }
0x2abb   :  { %v2742_v27 = vpop.f32.mrf.mxu0 }
0x2b40   :  { %v1954_v46 = vpop.xlane.xlu1 %1953 }
0x2b41   :  { %v1955_v57 = vsub.f32 %v1946_v45, %v1954_v46 }
0x2b43   :  { %v1956_v58 = vmul.f32 1.442695, %v1955_v57 }
0x2b45   :  { %2906 = vpow2.f32 %v1956_v58 }
0x2b52   :  { %v2907_v62 = vpop.eup %2906 }
0x2b53   :  { %2008 = vrot.lane.b32.xlu0 %v2907_v62, %s3000_s27  ;;  %v1958_v19 = vpack.c.bf16 %v2907_v62, %v2907_v62  ;;  %v2002_v1 = vsel %vm300_vm2, %v2907_v62, 0.0 }
0x2b55   :  { %2748 = vmatmul.mubr.msk.bf16.vlgmr.msra.gmra.mxu0 %vm62_vm1, %v1958_v19 }
0x2b72   :  { %2003 = vadd.xlane.f32.xlu0 %v2002_v1 }
0x2b88   :  { %635 = vrot.lane.b32.xlu0 %v629_v63, %s2998_s17 }
0x2b8c   :  { %1824 = vrot.lane.b32.xlu0 %v1818_v9, %s2999_s22 }
0x2b90   :  { %1115 = vrot.lane.b32.xlu0 %v1109_v11, %s3001_s16 }
0x2b94   :  { %2073 = vrot.lane.b32.xlu0 %v1898_v43, %s3001_s16 }
0x2bc5   :  { %v2009_v49 = vpop.permute.xlu0 %2008 }
0x2bc6   :  { %v2011_v39 = vsel %vm300_vm2, %v2009_v49, 0.0 }
0x2bc7   :  { %2012 = vadd.xlane.f32.xlu1 %v2011_v39 }
0x2bd8   :  { %1585 = vrot.lane.b32.xlu1 %v1579_v33, %s2998_s17  ;;  %s2093_s17 = sshll.u32 %s3002_s3, 4  ;;  %s2094_s17 = int_to_ptr.vmem [resolvable:$true] %s2093_s17 }
0x2bd9   :  { %p2937_p1 = scmp.lt.s32.totalorder %s2094_s17, %s2094_s17 }
0x2bdc   :  { %875 = vrot.lane.b32.xlu1 %v869_v36, %s2999_s22 }
0x2be0   :  { %2068 = vrot.lane.b32.xlu1 %v3784_v47, %s2999_s22  ;;  %s2932_s22 = scalar_lea.vmem %s2094_s17, 128 }
0x2be1   :  { %p2933_p0 = scmp.ne.s32.totalorder %s2094_s17, %s2932_s22  ;;  %p2938_p2 = scmp.lt.s32.totalorder %s2932_s22, %s2932_s22 }
0x2be3   :  { %p2939_p3 = por %p2938_p2, %p2937_p1 }
0x2be5   :  { %p2940_p4 = pnand %p2939_p3, %p2933_p0 }
0x2bfb   :  { %v2004_v26 = vpop.xlane.xlu0 %2003 }
0x2bfc   :  { %2908 = vrcp.f32 %v2004_v26 }
0x2bff   :  { %v636_v0 = vpop.permute.xlu0 %635 }
0x2c00   :  { %639 = vst.msk [vmem:[#allocation2] sm:$0xff] %vm638_vm5, %v636_v0 }
0x2c03   :  { %v1825_v2 = vpop.permute.xlu0 %1824 }
0x2c07   :  { %v1116_v3 = vpop.permute.xlu0 %1115 }
0x2c09   :  { %v2909_v53 = vpop.eup %2908 }
0x2c0b   :  { %v2074_v4 = vpop.permute.xlu0 %2073 }
0x2c0c   :  { %2076 = vst.msk [vmem:[#allocation6] sm:$0xff] %vm62_vm1, %v2074_v4 }
0x2c15   :  { %v1996_v22 = vpop.f32.mrf.mxu0 }
0x2c16   :  { %v2006_v54 = vmul.f32 %v2909_v53, %v1996_v22 }
0x2c17   :  { %v2749_v5 = vpop.f32.mrf.mxu0 }
0x2c19   :  { %v1999_v12 = vpop.f32.mrf.mxu0 }
0x2c1b   :  { %v2750_v50 = vpop.f32.mrf.mxu0 }
0x2c50   :  { %v2013_v25 = vpop.xlane.xlu1 %2012 }
0x2c51   :  { %2910 = vrcp.f32 %v2013_v25 }
0x2c54   :  { %v1586_v13 = vpop.permute.xlu1 %1585 }
0x2c55   :  { %1588 = vst.msk [vmem:[#allocation2 + $0x8] sm:$0xff] %vm638_vm5, %v1586_v13 }
0x2c56   :  { %1827 = vst.msk [vmem:[#allocation2 + $0x8] sm:$0xff] %vm878_vm6, %v1825_v2 }
0x2c58   :  { %v876_v37 = vpop.permute.xlu1 %875 }
0x2c59   :  { %879 = vst.msk [vmem:[#allocation2] sm:$0xff] %vm878_vm6, %v876_v37 }
0x2c5a   :  { %1119 = vst.msk [vmem:[#allocation2] sm:$0xff] %vm1118_vm7, %v1116_v3 }
0x2c5c   :  { %v2069_v14 = vpop.permute.xlu1 %2068 }
0x2c5d   :  { %2071 = vst.msk [vmem:[#allocation4] sm:$0xff] %vm62_vm1, %v2069_v14 }
0x2c5e   :  { %v2911_v15 = vpop.eup %2910 }
0x2c5f   :  { %v2015_v23 = vmul.f32 %v2911_v15, %v1996_v22 }
0x2c61   :  { %v2016_v59 = vsel %vm62_vm1, %v2006_v54, %v2015_v23 }
0x2c62   :  { %v2017_v18 = vsel %vm316_vm3, %v2016_v59, %v3784_v47 }
0x2c63   :  { %v2018_v24 = vpack.c.bf16 %v2017_v18, %v2017_v18 }
0x2c65   :  { %2764 = vmatmul.mubr.msk.bf16.vlgmr.msra.gmra.mxu1 %vm355_vm4, %v2018_v24 }
0x2c66   :  { %2943 = shalt.err (!%p2940_p4)
}
0x2c67   :  { %2096 = dma.vmem_to_hbm [thread:$0]  %s2094_s17, 128, %s3848_s5, [#allocation5]  }
0x2c68   :  { %s3003_s9 = smov [#allocation6]  }
0x2c69   :  { %s2103_s10 = sshll.u32 %s3003_s9, 4  ;;  %s2104_s10 = int_to_ptr.vmem [resolvable:$true] %s2103_s10 }
0x2c6a   :  { %s2952_s11 = scalar_lea.vmem %s2104_s10, 128  ;;  %p2957_p6 = scmp.lt.s32.totalorder %s2104_s10, %s2104_s10 }
0x2c6b   :  { %p2953_p5 = scmp.ne.s32.totalorder %s2104_s10, %s2952_s11  ;;  %p2958_p7 = scmp.lt.s32.totalorder %s2952_s11, %s2952_s11 }
0x2c6d   :  { %p2959_p8 = por %p2958_p7, %p2957_p6 }
0x2c6f   :  { %p2960_p9 = pnand %p2959_p8, %p2953_p5 }
0x2c71   :  { %2963 = shalt.err (!%p2960_p9)
}
0x2c72   :  { %2106 = dma.vmem_to_hbm [thread:$0]  %s2104_s10, 128, %s3849_s6, [#allocation5]  }
0x2c73   :  { %s3004_s5 = smov [#allocation2]  }
0x2c74   :  { %s2083_s14 = sshll.u32 %s3004_s5, 4  ;;  %s2084_s14 = int_to_ptr.vmem [resolvable:$true] %s2083_s14 }
0x2c75   :  { %s2972_s15 = scalar_lea.vmem %s2084_s14, 256  ;;  %p2977_p11 = scmp.lt.s32.totalorder %s2084_s14, %s2084_s14 }
0x2c76   :  { %p2973_p10 = scmp.ne.s32.totalorder %s2084_s14, %s2972_s15  ;;  %p2978_p12 = scmp.lt.s32.totalorder %s2972_s15, %s2972_s15 }
0x2c78   :  { %p2979_p13 = por %p2978_p12, %p2977_p11 }
0x2c7a   :  { %p2980_p0 = pnand %p2979_p13, %p2973_p10 }
0x2d25   :  { %v2056_v29 = vpop.f32.mrf.mxu1 }
0x2d26   :  { %v2057_v60 = vadd.f32 %v3802_v38, %v2056_v29 }
0x2d27   :  { %v2765_v61 = vpop.f32.mrf.mxu1 }
0x2d28   :  { %2063 = vrot.lane.b32.xlu1 %v2057_v60, %s3001_s16 }
0x2d29   :  { %v2059_v42 = vpop.f32.mrf.mxu1 }
0x2d2b   :  { %v2766_v16 = vpop.f32.mrf.mxu1 }
0x2d9a   :  { %v2064_v30 = vpop.permute.xlu1 %2063 }
0x2d9b   :  { %2066 = vst.msk [vmem:[#allocation2 + $0x8] sm:$0xff] %vm1118_vm7, %v2064_v30 }
0x2d9c   :  { %2983 = shalt.err (!%p2980_p0)
}
0x2d9d   :  { %2086 = dma.vmem_to_hbm [thread:$0]  %s2084_s14, 256, %s3847_s4, [#allocation3]  }
0x2d9e   :  { %2992 = dma.done.wait [#allocation3], 256  }
0x2d9f   :  { %2993 = vsyncadd [#allocation3], 4294967040 }
0x2da0   :  { %2994 = dma.done.wait [#allocation5], 256  }
0x2da1   :  { %2995 = vsyncadd [#allocation5], 4294967040 }
0x2da2   :  { %2116 = vsyncpa [#allocation3], 1 }
0x2da3   :  { %2117 = vsyncpa [#allocation5], 1 }

</bundles_post_ra>
